<compile_context>
chip_gen: v6e
topology: v6e:2x2x1
jax: 0.10.0
libtpu: 0.0.40
codegen_flags: <defaults>
</compile_context>

<pallas_src>
import functools
import math

import jax
import jax.numpy as jnp
from jax.experimental import pallas as pl
from jax.experimental.pallas import tpu as pltpu


# --------------------------------------------------------------------------
# Fused Pallas kernel: PseudoGrid aggregation + 1x1 output conv
#   w[k, m]   = clamp(1 - |rel[m] - K_points[k]| / extent, 0) * fmask[m]
#   wk[c, m]  = sum_k kernel_weights[k, c] * w[k, m]
#   agg[c, n] = sum_{s} wk[c, n*S+s] * feats[c, n*S+s]
#   y[co, n]  = sum_c conv_w[co, c] * agg[c, n]
# (KP_influence == 'linear', convolution_mode == 'sum', output_conv path)
# --------------------------------------------------------------------------
def _pseudo_grid_fused_kernel(rel_ref, feat_ref, fmask_ref, kp_ref, kwt_ref,
                              cw_ref, seg_ref, out_ref, *, extent):
    rel = rel_ref[0]            # [3, M]        M = N1 * nsample
    feats = feat_ref[0]         # [C_in, M]
    fmask = fmask_ref[0]        # [1, M]
    kp = kp_ref[...]            # [K, 3]
    kwt = kwt_ref[...]          # [C_in, K]     (kernel_weights transposed)
    cw = cw_ref[...]            # [C_out, C_in]
    seg = seg_ref[...]          # [M, N1]       0/1 segment-sum matrix

    # ||rel - kp||^2 via expansion: one small MXU matmul, no lane slicing of
    # the 3-wide coordinate dim into an [.., 3]-shaped tensor.
    rx, ry, rz = rel[0:1, :], rel[1:2, :], rel[2:3, :]
    rel2 = rx * rx + ry * ry + rz * rz                               # [1, M]
    kp2 = jnp.sum(kp * kp, axis=1, keepdims=True)                    # [K, 1]
    cross = jnp.dot(kp, rel, preferred_element_type=jnp.float32)     # [K, M]
    sq = jnp.maximum(rel2 - 2.0 * cross + kp2, 0.0)                  # [K, M]

    # Linear KP influence, masked (f32 VPU math; v5e has no bf16 VPU).
    w = jnp.maximum(1.0 - jnp.sqrt(sq) * (1.0 / extent), 0.0)        # [K, M]
    w = w * fmask                                                    # broadcast over K

    # NOTE: MXU operands kept in f32 for exact parity with the torch reference;
    # casting w/kwt/feats/cw to bf16 (f32 accumulate) doubles MXU rate if a
    # looser tolerance is acceptable.
    wk = jnp.dot(kwt, w, preferred_element_type=jnp.float32)         # [C_in, M]

    # Weighted features, summed over the neighborhood via MXU segment-matmul.
    prod = wk * feats                                                # [C_in, M]
    agg = jnp.dot(prod, seg, preferred_element_type=jnp.float32)     # [C_in, N1]

    # Fused 1x1 output conv (no bias) -> torch NCW layout directly.
    y = jnp.dot(cw, agg, preferred_element_type=jnp.float32)         # [C_out, N1]
    out_ref[0] = y.astype(out_ref.dtype)


def pseudo_grid_aggregate_conv(rel_cf, feats_cf, fmask, k_points,
                               kernel_weights, conv_weight, extent, n1):
    b, _, m = rel_cf.shape
    c_in = feats_cf.shape[1]
    c_out = conv_weight.shape[0]
    k = k_points.shape[0]
    nsample = m // n1

    # 0/1 segment-sum matrix: seg[m, n] = 1 iff m // nsample == n.
    seg = (jnp.arange(m, dtype=jnp.int32)[:, None] // nsample
           == jnp.arange(n1, dtype=jnp.int32)[None, :]).astype(jnp.float32)

    kernel = functools.partial(_pseudo_grid_fused_kernel, extent=float(extent))
    return pl.pallas_call(
        kernel,
        out_shape=jax.ShapeDtypeStruct((b, c_out, n1), jnp.float32),
        grid=(b,),
        in_specs=[
            pl.BlockSpec((1, 3, m), lambda i: (i, 0, 0)),        # rel
            pl.BlockSpec((1, c_in, m), lambda i: (i, 0, 0)),     # feats
            pl.BlockSpec((1, 1, m), lambda i: (i, 0, 0)),        # fmask
            pl.BlockSpec((k, 3), lambda i: (0, 0)),              # K_points
            pl.BlockSpec((c_in, k), lambda i: (0, 0)),           # kernel_weights.T
            pl.BlockSpec((c_out, c_in), lambda i: (0, 0)),       # conv weight
            pl.BlockSpec((m, n1), lambda i: (0, 0)),             # segment-sum matrix
        ],
        out_specs=pl.BlockSpec((1, c_out, n1), lambda i: (i, 0, 0)),
        compiler_params=pltpu.CompilerParams(
            dimension_semantics=("parallel",)),
    )(rel_cf, feats_cf, fmask, k_points, kernel_weights.T, conv_weight, seg)


# --------------------------------------------------------------------------
# Plain-JAX glue: MaskedQueryAndGroup (ball query + grouping).
# Data-dependent gather -> done in JAX, feeds the Pallas kernel lane-dense,
# channels-first tensors so no in-kernel reshapes/transposes are needed.
# --------------------------------------------------------------------------
def masked_query_and_group(query_xyz, support_xyz, query_mask, support_mask,
                           support_features, radius, nsample):
    # TODO(synk): the original CUDA masked_ordered_ball_query picks the first
    # nsample in-radius neighbors in its own traversal order; here we pick the
    # nearest nsample in-radius valid neighbors (deterministic; identical when
    # <= nsample neighbors fall inside the radius).
    diff = query_xyz[:, :, None, :] - support_xyz[:, None, :, :]   # [B,N1,N2,3]
    dist2 = jnp.sum(diff * diff, axis=-1)                          # [B,N1,N2]
    valid = (dist2 < radius * radius) & (support_mask[:, None, :] > 0)

    # top_k (k << N2) instead of a full argsort over N2.
    neg_key = jnp.where(valid, -dist2, -jnp.inf)
    _, order = jax.lax.top_k(neg_key, nsample)                     # [B,N1,S]
    sel_valid = jnp.take_along_axis(valid, order, axis=-1)         # [B,N1,S]
    idx = jnp.where(sel_valid, order, order[:, :, :1])             # pad w/ nearest
    neigh_mask = sel_valid.astype(jnp.float32)

    gather_last = jax.vmap(lambda arr, ii: jnp.take(arr, ii, axis=-1))
    sxyz_cf = jnp.transpose(support_xyz, (0, 2, 1))                # [B,3,N2]
    grouped_xyz_cf = gather_last(sxyz_cf, idx)                     # [B,3,N1,S]
    rel_cf = grouped_xyz_cf - jnp.transpose(query_xyz, (0, 2, 1))[:, :, :, None]
    grouped_feats_cf = gather_last(support_features, idx)          # [B,C,N1,S]
    return grouped_feats_cf, rel_cf, neigh_mask


# --------------------------------------------------------------------------
# Full PseudoGrid forward
# --------------------------------------------------------------------------
def pseudo_grid_forward(query_xyz, support_xyz, query_mask, support_mask,
                        support_features, *, radius, nsample, extent,
                        k_points, kernel_weights, conv_weight, bn_eps=1e-5):
    b, n1, _ = query_xyz.shape
    c_in = support_features.shape[1]

    grouped_feats_cf, rel_cf, neigh_mask = masked_query_and_group(
        query_xyz, support_xyz, query_mask, support_mask, support_features,
        radius, nsample)

    # feature_mask = neighborhood_mask + (1 - query_mask)   (spec formula)
    fmask = neigh_mask + (1.0 - query_mask[:, :, None])            # [B,N1,S]

    # Layout plumbing hoisted out of the kernel: lane-dense [*, N1*S].
    m = n1 * nsample
    rel_flat = rel_cf.reshape(b, 3, m).astype(jnp.float32)
    feats_flat = grouped_feats_cf.reshape(b, c_in, m).astype(jnp.float32)
    fmask_flat = fmask.reshape(b, 1, m).astype(jnp.float32)

    # Fused Pallas kernel: KP weights + aggregation + 1x1 conv -> [B,C_out,N1]
    y = pseudo_grid_aggregate_conv(rel_flat, feats_flat, fmask_flat,
                                   k_points, kernel_weights, conv_weight,
                                   extent, n1)

    # BatchNorm1d (fresh module => training-mode batch stats, gamma=1, beta=0)
    # + ReLU.  Cross-batch reduction kept as JAX glue.
    # TODO(synk): inference parity with a trained torch module needs running stats.
    mean = jnp.mean(y, axis=(0, 2), keepdims=True)
    var = jnp.mean((y - mean) ** 2, axis=(0, 2), keepdims=True)
    y = (y - mean) / jnp.sqrt(var + bn_eps)
    return jnp.maximum(y, 0.0)


# --------------------------------------------------------------------------
# Main
# --------------------------------------------------------------------------
if __name__ == "__main__":
    key = jax.random.PRNGKey(0)
    k_xyz, k_smask, k_feat, k_kp1, k_kp2, k_kw, k_cw = jax.random.split(key, 7)

    # config (mirrors PseudoGrid.__init__)
    B, N1, N2 = 2, 64, 64
    C_in, C_out = 32, 64
    radius = 0.5
    nsample = 16
    num_kernel_points = 15
    KP_extent = 1.0
    density_parameter = 5.0
    extent = 2.0 * KP_extent * radius / density_parameter
    K_radius = 1.5 * extent

    # kernel points: center + deterministic points inside the kernel ball
    # TODO(synk): exact KPConv create_kernel_points (Lloyd-style optimization)
    # is not reproduced; deterministic points in the same ball are used.
    dirs = jax.random.normal(k_kp1, (num_kernel_points - 1, 3))
    dirs = dirs / jnp.linalg.norm(dirs, axis=-1, keepdims=True)
    rad = K_radius * jax.random.uniform(k_kp2, (num_kernel_points - 1, 1)) ** (1.0 / 3.0)
    K_points = jnp.concatenate(
        [jnp.zeros((1, 3), jnp.float32), (dirs * rad).astype(jnp.float32)], axis=0)

    # trainable parameters (deterministic init)
    kernel_weights = (jax.random.normal(k_kw, (num_kernel_points, C_in))
                      * (1.0 / math.sqrt(C_in))).astype(jnp.float32)
    conv_weight = (jax.random.normal(k_cw, (C_out, C_in))
                   * (1.0 / math.sqrt(C_in))).astype(jnp.float32)

    # inputs
    support_xyz = jax.random.uniform(k_xyz, (B, N2, 3), dtype=jnp.float32)
    query_xyz = support_xyz                      # N1 == N2 query points
    query_mask = jnp.ones((B, N1), jnp.float32)
    support_mask = (jax.random.uniform(k_smask, (B, N2)) > 0.1).astype(jnp.float32)
    support_features = jax.random.normal(k_feat, (B, C_in, N2), dtype=jnp.float32)

    out = pseudo_grid_forward(
        query_xyz, support_xyz, query_mask, support_mask, support_features,
        radius=radius, nsample=nsample, extent=extent,
        k_points=K_points, kernel_weights=kernel_weights,
        conv_weight=conv_weight)

    out = jax.block_until_ready(out)
    assert out.shape == (B, C_out, N1)
    print("KERNEL_OK")
</pallas_src>

<mosaic_0001>
module attributes {stable_mosaic.version = 11 : i64} {
  func.func @_pseudo_grid_fused_kernel(%arg0: i32, %arg1: memref<1x3x1024xf32, #tpu.memory_space<vmem>>, %arg2: memref<1x32x1024xf32, #tpu.memory_space<vmem>>, %arg3: memref<1x1x1024xf32, #tpu.memory_space<vmem>>, %arg4: memref<15x3xf32, #tpu.memory_space<vmem>>, %arg5: memref<32x15xf32, #tpu.memory_space<vmem>>, %arg6: memref<64x32xf32, #tpu.memory_space<vmem>>, %arg7: memref<1024x64xf32, #tpu.memory_space<vmem>>, %arg8: memref<1x64x64xf32, #tpu.memory_space<vmem>>) attributes {dimension_semantics = [#tpu.dimension_semantics<parallel>], iteration_bounds = array<i64: 2>, scalar_prefetch = 0 : i64, scratch_operands = 0 : i64, tpu.core_type = #tpu.core_type<tc>, window_params = [{transform_indices = @transform_0, window_bounds = array<i64: 1, 3, 1024>}, {transform_indices = @transform_1, window_bounds = array<i64: 1, 32, 1024>}, {transform_indices = @transform_2, window_bounds = array<i64: 1, 1, 1024>}, {pipeline_mode = #tpu.pipeline_mode<synchronous>, transform_indices = @transform_3, window_bounds = array<i64: 15, 3>}, {pipeline_mode = #tpu.pipeline_mode<synchronous>, transform_indices = @transform_4, window_bounds = array<i64: 32, 15>}, {pipeline_mode = #tpu.pipeline_mode<synchronous>, transform_indices = @transform_5, window_bounds = array<i64: 64, 32>}, {pipeline_mode = #tpu.pipeline_mode<synchronous>, transform_indices = @transform_6, window_bounds = array<i64: 1024, 64>}, {transform_indices = @transform_7, window_bounds = array<i64: 1, 64, 64>}]} {
    %c0 = arith.constant 0 : index
    %c0_0 = arith.constant 0 : index
    %c0_1 = arith.constant 0 : index
    %0 = vector.load %arg1[%c0, %c0_0, %c0_1] : memref<1x3x1024xf32, #tpu.memory_space<vmem>>, vector<1x3x1024xf32>
    %1 = vector.shape_cast %0 : vector<1x3x1024xf32> to vector<3x1024xf32>
    %c0_2 = arith.constant 0 : index
    %c0_3 = arith.constant 0 : index
    %c0_4 = arith.constant 0 : index
    %2 = vector.load %arg2[%c0_2, %c0_3, %c0_4] : memref<1x32x1024xf32, #tpu.memory_space<vmem>>, vector<1x32x1024xf32>
    %3 = vector.shape_cast %2 : vector<1x32x1024xf32> to vector<32x1024xf32>
    %c0_5 = arith.constant 0 : index
    %c0_6 = arith.constant 0 : index
    %c0_7 = arith.constant 0 : index
    %4 = vector.load %arg3[%c0_5, %c0_6, %c0_7] : memref<1x1x1024xf32, #tpu.memory_space<vmem>>, vector<1x1x1024xf32>
    %5 = vector.shape_cast %4 : vector<1x1x1024xf32> to vector<1x1024xf32>
    %c0_8 = arith.constant 0 : index
    %c0_9 = arith.constant 0 : index
    %6 = vector.load %arg4[%c0_8, %c0_9] : memref<15x3xf32, #tpu.memory_space<vmem>>, vector<15x3xf32>
    %c0_10 = arith.constant 0 : index
    %c0_11 = arith.constant 0 : index
    %7 = vector.load %arg5[%c0_10, %c0_11] : memref<32x15xf32, #tpu.memory_space<vmem>>, vector<32x15xf32>
    %c0_12 = arith.constant 0 : index
    %c0_13 = arith.constant 0 : index
    %8 = vector.load %arg6[%c0_12, %c0_13] : memref<64x32xf32, #tpu.memory_space<vmem>>, vector<64x32xf32>
    %c0_14 = arith.constant 0 : index
    %c0_15 = arith.constant 0 : index
    %9 = vector.load %arg7[%c0_14, %c0_15] : memref<1024x64xf32, #tpu.memory_space<vmem>>, vector<1024x64xf32>
    %10 = vector.extract_strided_slice %1 {offsets = [0, 0], sizes = [1, 1024], strides = [1, 1]} : vector<3x1024xf32> to vector<1x1024xf32>
    %11 = vector.extract_strided_slice %1 {offsets = [1, 0], sizes = [1, 1024], strides = [1, 1]} : vector<3x1024xf32> to vector<1x1024xf32>
    %12 = vector.extract_strided_slice %1 {offsets = [2, 0], sizes = [1, 1024], strides = [1, 1]} : vector<3x1024xf32> to vector<1x1024xf32>
    %13 = arith.mulf %10, %10 : vector<1x1024xf32>
    %14 = arith.mulf %11, %11 : vector<1x1024xf32>
    %15 = arith.addf %13, %14 : vector<1x1024xf32>
    %16 = arith.mulf %12, %12 : vector<1x1024xf32>
    %17 = arith.addf %15, %16 : vector<1x1024xf32>
    %18 = arith.mulf %6, %6 : vector<15x3xf32>
    %cst = arith.constant dense<0.000000e+00> : vector<15xf32>
    %19 = vector.multi_reduction <add>, %18, %cst [1] : vector<15x3xf32> to vector<15xf32>
    %20 = vector.shape_cast %19 : vector<15xf32> to vector<15x1xf32>
    %cst_16 = arith.constant dense<0.000000e+00> : vector<15x1024xf32>
    %21 = tpu.matmul %6, %1, %cst_16 {dimension_numbers = #tpu.dot_dimension_numbers<[1], [0], [0], [1], [0, 0, 1, 1], [], []>} : vector<15x3xf32>, vector<3x1024xf32>, vector<15x1024xf32> -> vector<15x1024xf32>
    %cst_17 = arith.constant 2.000000e+00 : f32
    %22 = vector.broadcast %cst_17 : f32 to vector<15x1024xf32>
    %23 = arith.mulf %22, %21 : vector<15x1024xf32>
    %24 = vector.broadcast %17 : vector<1x1024xf32> to vector<15x1024xf32>
    %25 = arith.subf %24, %23 : vector<15x1024xf32>
    %26 = vector.broadcast %20 : vector<15x1xf32> to vector<15x1024xf32>
    %27 = arith.addf %25, %26 : vector<15x1024xf32>
    %cst_18 = arith.constant 0.000000e+00 : f32
    %28 = vector.broadcast %cst_18 : f32 to vector<15x1024xf32>
    %29 = arith.maximumf %27, %28 : vector<15x1024xf32>
    %30 = math.sqrt %29 : vector<15x1024xf32>
    %cst_19 = arith.constant 5.000000e+00 : f32
    %31 = vector.broadcast %cst_19 : f32 to vector<15x1024xf32>
    %32 = arith.mulf %30, %31 : vector<15x1024xf32>
    %cst_20 = arith.constant 1.000000e+00 : f32
    %33 = vector.broadcast %cst_20 : f32 to vector<15x1024xf32>
    %34 = arith.subf %33, %32 : vector<15x1024xf32>
    %cst_21 = arith.constant 0.000000e+00 : f32
    %35 = vector.broadcast %cst_21 : f32 to vector<15x1024xf32>
    %36 = arith.maximumf %34, %35 : vector<15x1024xf32>
    %37 = vector.broadcast %5 : vector<1x1024xf32> to vector<15x1024xf32>
    %38 = arith.mulf %36, %37 : vector<15x1024xf32>
    %cst_22 = arith.constant dense<0.000000e+00> : vector<32x1024xf32>
    %39 = tpu.matmul %7, %38, %cst_22 {dimension_numbers = #tpu.dot_dimension_numbers<[1], [0], [0], [1], [0, 0, 1, 1], [], []>} : vector<32x15xf32>, vector<15x1024xf32>, vector<32x1024xf32> -> vector<32x1024xf32>
    %40 = arith.mulf %39, %3 : vector<32x1024xf32>
    %cst_23 = arith.constant dense<0.000000e+00> : vector<32x64xf32>
    %41 = tpu.matmul %40, %9, %cst_23 {dimension_numbers = #tpu.dot_dimension_numbers<[1], [0], [0], [1], [0, 0, 1, 1], [], []>} : vector<32x1024xf32>, vector<1024x64xf32>, vector<32x64xf32> -> vector<32x64xf32>
    %cst_24 = arith.constant dense<0.000000e+00> : vector<64x64xf32>
    %42 = tpu.matmul %8, %41, %cst_24 {dimension_numbers = #tpu.dot_dimension_numbers<[1], [0], [0], [1], [0, 0, 1, 1], [], []>} : vector<64x32xf32>, vector<32x64xf32>, vector<64x64xf32> -> vector<64x64xf32>
    %c0_25 = arith.constant 0 : index
    %c0_26 = arith.constant 0 : index
    %c0_27 = arith.constant 0 : index
    %43 = vector.load %arg8[%c0_25, %c0_26, %c0_27] : memref<1x64x64xf32, #tpu.memory_space<vmem>>, vector<1x64x64xf32>
    %44 = vector.shape_cast %43 : vector<1x64x64xf32> to vector<64x64xf32>
    %45 = vector.shape_cast %42 : vector<64x64xf32> to vector<1x64x64xf32>
    tpu.vector_store %arg8[%c0_25, %c0_26, %c0_27], %45 {strides = array<i32>} : memref<1x64x64xf32, #tpu.memory_space<vmem>>, vector<1x64x64xf32>,
    return
  }
  func.func @transform_0(%arg0: i32) -> (i32, i32, i32) {
    %c0_i32 = arith.constant 0 : i32
    %c0_i32_0 = arith.constant 0 : i32
    %c0_i32_1 = arith.constant 0 : i32
    return %arg0, %c0_i32, %c0_i32_0 : i32, i32, i32
  }
  func.func @transform_1(%arg0: i32) -> (i32, i32, i32) {
    %c0_i32 = arith.constant 0 : i32
    %c0_i32_0 = arith.constant 0 : i32
    %c0_i32_1 = arith.constant 0 : i32
    return %arg0, %c0_i32, %c0_i32_0 : i32, i32, i32
  }
  func.func @transform_2(%arg0: i32) -> (i32, i32, i32) {
    %c0_i32 = arith.constant 0 : i32
    %c0_i32_0 = arith.constant 0 : i32
    %c0_i32_1 = arith.constant 0 : i32
    return %arg0, %c0_i32, %c0_i32_0 : i32, i32, i32
  }
  func.func @transform_3(%arg0: i32) -> (i32, i32) {
    %c0_i32 = arith.constant 0 : i32
    %c0_i32_0 = arith.constant 0 : i32
    %c0_i32_1 = arith.constant 0 : i32
    return %c0_i32, %c0_i32_0 : i32, i32
  }
  func.func @transform_4(%arg0: i32) -> (i32, i32) {
    %c0_i32 = arith.constant 0 : i32
    %c0_i32_0 = arith.constant 0 : i32
    %c0_i32_1 = arith.constant 0 : i32
    return %c0_i32, %c0_i32_0 : i32, i32
  }
  func.func @transform_5(%arg0: i32) -> (i32, i32) {
    %c0_i32 = arith.constant 0 : i32
    %c0_i32_0 = arith.constant 0 : i32
    %c0_i32_1 = arith.constant 0 : i32
    return %c0_i32, %c0_i32_0 : i32, i32
  }
  func.func @transform_6(%arg0: i32) -> (i32, i32) {
    %c0_i32 = arith.constant 0 : i32
    %c0_i32_0 = arith.constant 0 : i32
    %c0_i32_1 = arith.constant 0 : i32
    return %c0_i32, %c0_i32_0 : i32, i32
  }
  func.func @transform_7(%arg0: i32) -> (i32, i32, i32) {
    %c0_i32 = arith.constant 0 : i32
    %c0_i32_0 = arith.constant 0 : i32
    %c0_i32_1 = arith.constant 0 : i32
    return %arg0, %c0_i32, %c0_i32_0 : i32, i32, i32
  }
}

</mosaic_0001>

<bundles_post_ra>
// kernel: tpu_custom_call.1
= control target key start
LH: loop header
LB: loop body
LE: loop exit
PB: predicated region body
PF: predicated region fallthrough
CT: control target
= control target key end

     0   :  { %12 = vsyncpa [#allocation3], 0  ;;  %s3670_s0 = inlined_call_operand.vmem [shape: f32[2,3,1024], index: 0, kind: input, shape index: {}]   ;;  %s3671_s1 = inlined_call_operand.vmem [shape: f32[2,32,1024], index: 1, kind: input, shape index: {}]   ;;  %s3672_s2 = inlined_call_operand.vmem [shape: f32[2,1,1024], index: 2, kind: input, shape index: {}]   ;;  %s3673_s3 = inlined_call_operand.vmem [shape: f32[15,3], index: 3, kind: input, shape index: {}]   ;;  %s3674_s4 = inlined_call_operand.vmem [shape: f32[32,15], index: 4, kind: input, shape index: {}]   ;;  %s3675_s5 = inlined_call_operand.vmem [shape: f32[64,32], index: 5, kind: input, shape index: {}]   ;;  %s3676_s6 = inlined_call_operand.vmem [shape: f32[1024,64], index: 6, kind: input, shape index: {}]   ;;  %s3677_s7 = inlined_call_operand.hbm [shape: f32[2,64,64], index: 7, kind: output, shape index: {}]  }
   0x1   :  { %14 = vsyncpa [#allocation3 + $0x1], 0  ;;  %s2710_s24 = smov 0   ;;  %s2712_s25 = smov 0  }
   0x2   :  { %s2714_s26 = smov 0   ;;  %s2716_s27 = smov 0  }
   0x3 LB: > { %s2731_s28 = sadd.s32 4294967295, %s2664_s27   ;;  %s2244_s29 = sadd.s32 4294967294, %s2664_s27   ;;  %s2664_s27 = sphi %s2716_s27, %s3683_s27   ;;  %s2660_s26 = sphi %s2714_s26, %s3682_s26   ;;  %s2656_s25 = sphi %s2712_s25, %s3681_s25   ;;  %s2652_s24 = sphi %s2710_s24, %s3680_s24  }
   0x4   : > { %s2735_s30 = sadd.s32 1, %s2664_s27   ;;  %s189_s8 = sadd.s32 1, %s2660_s26 }
   0x5   : > { %s186_s9 = ssub.s32 %s2664_s27, %s2735_s30  ;;  %p199_p0 = scmp.ne.s32.totalorder %s2660_s26, %s2656_s25 }
   0x6   : > { %p187_p1 = scmp.eq.s32.totalorder %s186_s9, 0  ;;  %p200_p2 = scmp.eq.s32.totalorder %s2731_s28, 1 }
   0x7   : > { %p205_p3 = scmp.ne.s32.totalorder %s2656_s25, %s2652_s24  ;;  %p206_p4 = scmp.eq.s32.totalorder %s2244_s29, 1 }
   0x8   : > { %s2746_s10 = scalar_select %p187_p1, %s2660_s26, %s189_s8  }
   0x9   : > { %p2748_p5 = por %p200_p2, %p199_p0  ;;  %p2752_p6 = por %p206_p4, %p205_p3 }
   0xa   : > { %p2247_p7 = scmp.ge.s32.totalorder %s2664_s27, 1  ;;  %p259_p8 = scmp.lt.s32.totalorder %s2664_s27, 3 }
   0xc   : > { %p260_p9 = pnand %p2247_p7, %p259_p8 }
   0xd   : > { %p300_p10 = scmp.lt.s32.totalorder (!%p260_p9), %s2731_s28, 1  ;;  %s2317_s29 = sshll.u32 (!%p260_p9), %s2731_s28, 10 }
   0xe   : > { %263 = sbr.rel (%p260_p9) target bundleno = 951 (0x3b7), region = 48  ;;  %s2667_s17 = smov (!%p260_p9), [#allocation2]  }
   0xf   : > { %s2608_s18 = sshll.u32 (!%p260_p9), %s2667_s17, 4  ;;  %s2609_s18 = int_to_ptr.vmem [resolvable:$false] %s2608_s18 }
  0x13   : > { %v2666_v0 = vmov 0.0   ;;  %v352_v1 = vld [vmem:[%s3673_s3 + $0x8] sm:$0x7f]  ;;  %vm539_vm0 = vcmask 22528   ;;  %s2765_s15 = scalar_select %p300_p10, %s2731_s28, 1  ;;  %v351_v4 = vld [vmem:[%s3673_s3] sm:$0xff]  ;;  %v902_v18 = vlaneseq }
  0x14   : > { %638 = vmatprep.mubr.f32.mxu1 %v2666_v0  ;;  %792 = vmatprep.mubr.f32.mxu0 %v2666_v0  ;;  %v534_v2 = vmul.f32 %v352_v1, %v352_v1  ;;  %vm557_vm1 = vcmask 1042432   ;;  %v533_v7 = vmul.f32 %v351_v4, %v351_v4  ;;  %vm535_vm2 = vcmask 23552  }
  0x15   : > { %s2315_s16 = sshll.u32 %s2765_s15, 5  ;;  %v2799_v24 = vshrl.u32 %v902_v18, 7  ;;  %s2253_s22 = sshll.u32 %s2765_s15, 3  ;;  %vm1252_vm15 = vcmask 1046528  }
  0x16   : > { %v540_v3 = vsel %vm539_vm0, %v534_v2, 0.0  ;;  %s304_s19 = scalar_lea.vmem %s3670_s0, %s2315_s16  ;;  %v536_v13 = vsel %vm535_vm2, %v533_v7, 0.0  ;;  %s313_s8 = scalar_lea.vmem %s3672_s2, %s2253_s22  ;;  %vm1239_vm0 = vcmask 121856  }
  0x17   : > { %541 = vadd.xlane.f32.xlu0 %v540_v3  ;;  %v314_v5 = vld [vmem:[%s304_s19] sm:$0x77]  ;;  %v316_v6 = vld [vmem:[%s304_s19 + $0x10] sm:$0x77]  ;;  %v315_v10 = vld [vmem:[%s304_s19 + $0x8] sm:$0x77] }
  0x18   : > { %v547_v8 = vcombine.high %v314_v5, %v314_v5  ;;  %v549_v9 = vcombine.high %v316_v6, %v316_v6  ;;  %v548_v11 = vcombine.high %v315_v10, %v315_v10  ;;  %v317_v12 = vld [vmem:[%s304_s19 + $0x18] sm:$0x77]  ;;  %v493_v15 = vmul.f32 %v314_v5, %v314_v5  ;;  %v2812_v58 = vld [vmem:[%s313_s8] sm:$0xff]  ;;  %s2316_s23 = sshll.u32 %s2765_s15, 8  ;;  %s3624_s15 = scalar_lea.hbm %s3677_s7, %s2317_s29 }
  0x19   : > { %v550_v14 = vcombine.high %v317_v12, %v317_v12  ;;  %v495_v16 = vmul.f32 %v316_v6, %v316_v6  ;;  %v494_v19 = vmul.f32 %v315_v10, %v315_v10  ;;  %v496_v20 = vmul.f32 %v317_v12, %v317_v12  ;;  %s3340_s9 = scalar_lea.vmem %s3671_s1, %s2316_s23  ;;  %s2610_s19 = scalar_lea.vmem %s2609_s18, 2048 }
  0x1a   : > { %2262 = vmatprep.subr.msk.mxu1 %vm557_vm1, %v547_v8  ;;  %2270 = vmatprep.subr.msk.mxu0 %vm557_vm1, %v549_v9  ;;  %v2254_v17 = vrot.slane %v493_v15, 9  ;;  %v2258_v23 = vrot.slane %v493_v15, 10  ;;  %v904_v30 = vsub.s32 0, %v2799_v24  ;;  %v908_v35 = vsub.s32 4, %v2799_v24 }
  0x1b   : > { %2263 = vmatpush1.msk.msra.mxu1 %vm557_vm1, %v314_v5  ;;  %2271 = vmatpush1.msk.msra.mxu0 %vm557_vm1, %v316_v6  ;;  %v2256_v21 = vrot.slane %v495_v16, 9  ;;  %v2255_v25 = vrot.slane %v494_v19, 9  ;;  %v2257_v26 = vrot.slane %v496_v20, 9  ;;  %v2260_v28 = vrot.slane %v495_v16, 10 }
  0x1c   : > { %2264 = vmatmul.mubr.msk.f32.vlgmr.msra.gmra.mxu1 %vm535_vm2, %v351_v4  ;;  %2272 = vmatmul.mubr.msk.f32.vlgmr.msra.gmra.mxu0 %vm535_vm2, %v351_v4  ;;  %v513_v22 = vadd.f32 %v2254_v17, %v493_v15  ;;  %v2259_v32 = vrot.slane %v494_v19, 10  ;;  %v2261_v34 = vrot.slane %v496_v20, 10  ;;  %v1189_v54 = vsub.s32 1, %v2799_v24 }
  0x1d   : > { %644 = vmatprep.mubr.f32.mxu1 %v2666_v0  ;;  %798 = vmatprep.mubr.f32.mxu0 %v2666_v0  ;;  %v515_v27 = vadd.f32 %v2256_v21, %v495_v16  ;;  %v514_v31 = vadd.f32 %v2255_v25, %v494_v19  ;;  %v516_v33 = vadd.f32 %v2257_v26, %v496_v20  ;;  %v1205_v15 = vsub.s32 5, %v2799_v24 }
  0x1e   : > { %2266 = vmatprep.subr.msk.mxu1 %vm557_vm1, %v548_v11  ;;  %537 = vadd.xlane.f32.xlu0 %v536_v13  ;;  %v529_v29 = vadd.f32 %v2258_v23, %v513_v22  ;;  %v2822_v9 = vrot.slane %v2812_v58, %v1189_v54  ;;  %v2832_v19 = vrot.slane %v2812_v58, %v908_v35 }
  0x1f   : > { %2267 = vmatpush1.msk.msra.mxu1 %vm557_vm1, %v315_v10  ;;  %v531_v36 = vadd.f32 %v2260_v28, %v515_v27  ;;  %v530_v39 = vadd.f32 %v2259_v32, %v514_v31  ;;  %v532_v40 = vadd.f32 %v2261_v34, %v516_v33 }
  0x20   : > { %2265 = vmatmul.mubr.msk.f32.gmra.mxu1 %vm535_vm2, %v352_v1  ;;  %2273 = vmatmul.mubr.msk.f32.gmra.mxu0 %vm535_vm2, %v352_v1  ;;  %v905_v38 = vrot.slane %v529_v29, %v904_v30  ;;  %v909_v41 = vrot.slane %v529_v29, %v908_v35 }
  0x21   : > { %715 = vmatprep.mubr.f32.mxu1 %v2666_v0  ;;  %2274 = vmatprep.subr.msk.mxu1 %vm557_vm1, %v550_v14  ;;  %v921_v42 = vrot.slane %v531_v36, %v904_v30  ;;  %v925_v44 = vrot.slane %v531_v36, %v908_v35  ;;  %v913_v47 = vrot.slane %v530_v39, %v904_v30 }
  0x22   : > { %1341 = vmatprep.mubr.f32.mxu0 %v2666_v0  ;;  %v945_v43 = vrot.slane %v905_v38, %v904_v30  ;;  %v917_v48 = vrot.slane %v530_v39, %v908_v35  ;;  %v929_v49 = vrot.slane %v532_v40, %v904_v30  ;;  %v933_v50 = vrot.slane %v532_v40, %v908_v35 }
  0x23   : > { %v949_v52 = vrot.slane %v909_v41, %v904_v30  ;;  %v961_v55 = vrot.slane %v921_v42, %v904_v30  ;;  %v965_v62 = vrot.slane %v925_v44, %v904_v30  ;;  %v953_v2 = vrot.slane %v913_v47, %v904_v30 }
  0x24   : > { %2268 = vmatmul.mubr.msk.f32.vlgmr.msra.gmra.mxu1 %vm535_vm2, %v351_v4  ;;  %v2814_v3 = vrot.slane %v917_v48, %v904_v30  ;;  %v2818_v5 = vrot.slane %v933_v50, %v904_v30  ;;  %v2825_v14 = vrot.slane %v2812_v58, %v904_v30  ;;  %v2841_v36 = vrot.slane %v2812_v58, %v1205_v15 }
  0x25   : > { %721 = vmatprep.mubr.f32.mxu1 %v2666_v0  ;;  %2275 = vmatpush1.msk.msra.mxu1 %vm557_vm1, %v317_v12 }
  0x28   : > { %2269 = vmatmul.mubr.msk.f32.gmra.mxu1 %vm535_vm2, %v352_v1 }
  0x29   : > { %869 = vmatprep.mubr.f32.mxu1 %v2666_v0 }
  0x2c   : > { %2276 = vmatmul.mubr.msk.f32.vlgmr.msra.gmra.mxu1 %vm535_vm2, %v351_v4  ;;  %v2816_v4 = vrot.slane %v929_v49, %v904_v30 }
  0x2d   : > { %875 = vmatprep.mubr.f32.mxu1 %v2666_v0 }
  0x30   : > { %2277 = vmatmul.mubr.msk.f32.gmra.mxu1 %vm535_vm2, %v352_v1 }
  0x31   : > { %1430 = vmatprep.mubr.f32.mxu1 %v2666_v0 }
  0xa0   : > { %v2803_v37 = vpop.xlane.xlu0 %541 }
  0xa7   : > { %v2809_v53 = vpop.xlane.xlu0 %537 }
  0xdc   : > { %v640_v45 = vpop.f32.mrf.mxu1  ;;  %v794_v46 = vpop.f32.mrf.mxu0 }
  0xdd   : > { %v882_v51 = vmul.f32 2.0, %v640_v45  ;;  %v886_v60 = vmul.f32 2.0, %v794_v46 }
  0xde   : > { %v642_v56 = vpop.f32.mrf.mxu1  ;;  %v796_v57 = vpop.f32.mrf.mxu0 }
  0xdf   : > { %v974_v59 = vsub.f32 %v945_v43, %v882_v51  ;;  %v883_v61 = vmul.f32 2.0, %v642_v56  ;;  %v887_v7 = vmul.f32 2.0, %v796_v57  ;;  %v978_v16 = vsub.f32 %v961_v55, %v886_v60 }
  0xe0   : > { %v646_v63 = vpop.f32.mrf.mxu1  ;;  %v800_v1 = vpop.f32.mrf.mxu0  ;;  %v1197_v57 = vsub.s32 3, %v2799_v24 }
  0xe1   : > { %v975_v6 = vsub.f32 %v949_v52, %v883_v61  ;;  %v990_v8 = vadd.f32 %v974_v59, %v2809_v53  ;;  %v890_v10 = vmul.f32 2.0, %v646_v63  ;;  %v894_v11 = vmul.f32 2.0, %v800_v1 }
  0xe2   : > { %v648_v12 = vpop.f32.mrf.mxu1  ;;  %v802_v13 = vpop.f32.mrf.mxu0  ;;  %v979_v26 = vsub.f32 %v965_v62, %v887_v7  ;;  %v1193_v59 = vsub.s32 2, %v2799_v24  ;;  %v1213_v7 = vsub.s32 7, %v2799_v24 }
  0xe3   : > { %v991_v17 = vadd.f32 %v975_v6, %v2809_v53  ;;  %v2829_v18 = vmax.f32 %v990_v8, 0.0  ;;  %v982_v20 = vsub.f32 %v945_v43, %v890_v10  ;;  %v986_v21 = vsub.f32 %v961_v55, %v894_v11 }
  0xe4   : > { %v891_v22 = vmul.f32 2.0, %v648_v12  ;;  %v895_v23 = vmul.f32 2.0, %v802_v13  ;;  %v717_v25 = vpop.f32.mrf.mxu1  ;;  %v994_v43 = vadd.f32 %v978_v16, %v2809_v53  ;;  %v995_v47 = vadd.f32 %v979_v26, %v2809_v53 }
  0xe5   : > { %v2834_v27 = vmax.f32 %v991_v17, 0.0  ;;  %v884_v28 = vmul.f32 2.0, %v717_v25  ;;  %2572 = vrsqrt.f32 %v2829_v18  ;;  %v998_v29 = vadd.f32 %v982_v20, %v2803_v37 }
  0xe6   : > { %v1002_v30 = vadd.f32 %v986_v21, %v2803_v37  ;;  %v983_v31 = vsub.f32 %v949_v52, %v891_v22  ;;  %v987_v32 = vsub.f32 %v965_v62, %v895_v23  ;;  %v719_v33 = vpop.f32.mrf.mxu1  ;;  %v2869_v63 = vmax.f32 %v994_v43, 0.0 }
  0xe7   : > { %v976_v34 = vsub.f32 %v953_v2, %v884_v28  ;;  %v885_v35 = vmul.f32 2.0, %v719_v33  ;;  %2574 = vrsqrt.f32 %v2834_v27  ;;  %v2843_v38 = vmax.f32 %v998_v29, 0.0 }
  0xe8   : > { %v2845_v39 = vmax.f32 %v1002_v30, 0.0  ;;  %v999_v40 = vadd.f32 %v983_v31, %v2803_v37  ;;  %v1003_v41 = vadd.f32 %v987_v32, %v2803_v37  ;;  %v723_v42 = vpop.f32.mrf.mxu1  ;;  %v2871_v1 = vmax.f32 %v995_v47, 0.0 }
  0xe9   : > { %v992_v44 = vadd.f32 %v976_v34, %v2809_v53  ;;  %v977_v45 = vsub.f32 %v2814_v3, %v885_v35  ;;  %v892_v46 = vmul.f32 2.0, %v723_v42  ;;  %2576 = vrsqrt.f32 %v2843_v38 }
  0xea   : > { %v2854_v48 = vmax.f32 %v999_v40, 0.0  ;;  %v2856_v49 = vmax.f32 %v1003_v41, 0.0  ;;  %v725_v50 = vpop.f32.mrf.mxu1  ;;  %2578 = vrsqrt.f32 %v2845_v39  ;;  %vm1031_vm3 = vcmp.eq.f32.partialorder %v2834_v27, inf }
  0xeb   : > { %v2859_v51 = vmax.f32 %v992_v44, 0.0  ;;  %v993_v52 = vadd.f32 %v977_v45, %v2809_v53  ;;  %v984_v54 = vsub.f32 %v953_v2, %v892_v46  ;;  %v893_v55 = vmul.f32 2.0, %v725_v50 }
  0xec   : > { %2580 = vrsqrt.f32 %v2854_v48  ;;  %v871_v56 = vpop.f32.mrf.mxu1  ;;  %v1090_v15 = vand.u32 2147483648, %v2854_v48  ;;  %vm1033_vm4 = vcmp.eq.f32.partialorder %v2834_v27, 0.0  ;;  %vm1080_vm5 = vcmp.eq.f32.partialorder %v2843_v38, inf }
  0xed   : > { %2582 = vrsqrt.f32 %v2856_v49  ;;  %v2866_v60 = vmax.f32 %v993_v52, 0.0  ;;  %v1000_v61 = vadd.f32 %v984_v54, %v2803_v37  ;;  %v888_v62 = vmul.f32 2.0, %v871_v56 }
  0xee   : > { %v985_v2 = vsub.f32 %v2814_v3, %v893_v55  ;;  %v873_v6 = vpop.f32.mrf.mxu1  ;;  %2584 = vrsqrt.f32 %v2859_v51  ;;  %v1083_v3 = vand.u32 2147483648, %v2843_v38  ;;  %v1034_v21 = vand.u32 2147483648, %v2834_v27 }
  0xef   : > { %v2876_v8 = vmax.f32 %v1000_v61, 0.0  ;;  %v980_v10 = vsub.f32 %v2816_v4, %v888_v62  ;;  %v889_v11 = vmul.f32 2.0, %v873_v6  ;;  %2586 = vrsqrt.f32 %v2866_v60 }
  0xf0   : > { %v1001_v12 = vadd.f32 %v985_v2, %v2803_v37  ;;  %v877_v13 = vpop.f32.mrf.mxu1  ;;  %vm1082_vm6 = vcmp.eq.f32.partialorder %v2843_v38, 0.0  ;;  %vm1024_vm7 = vcmp.eq.f32.partialorder %v2829_v18, inf  ;;  %vm1026_vm8 = vcmp.eq.f32.partialorder %v2829_v18, 0.0 }
  0xf1   : > { %v996_v16 = vadd.f32 %v980_v10, %v2809_v53  ;;  %v981_v17 = vsub.f32 %v2818_v5, %v889_v11  ;;  %v896_v20 = vmul.f32 2.0, %v877_v13  ;;  %2588 = vrsqrt.f32 %v2876_v8 }
  0xf2   : > { %v2573_v22 = vpop.eup %2572  ;;  %v2890_v23 = vmax.f32 %v1001_v12, 0.0  ;;  %v879_v25 = vpop.f32.mrf.mxu1  ;;  %vm1087_vm9 = vcmp.eq.f32.partialorder %v2854_v48, inf  ;;  %vm1089_vm10 = vcmp.eq.f32.partialorder %v2854_v48, 0.0  ;;  %v1027_v33 = vand.u32 2147483648, %v2829_v18 }
  0xf3   : > { %v2895_v26 = vmax.f32 %v996_v16, 0.0  ;;  %v997_v28 = vadd.f32 %v981_v17, %v2809_v53  ;;  %v988_v29 = vsub.f32 %v2816_v4, %v896_v20  ;;  %v897_v30 = vmul.f32 2.0, %v879_v25 }
  0xf4   : > { %v2575_v31 = vpop.eup %2574  ;;  %2590 = vrsqrt.f32 %v2890_v23  ;;  %v1023_v32 = vmul.f32 %v2573_v22, %v2829_v18  ;;  %vm1115_vm11 = vcmp.eq.f32.partialorder %v2856_v49, inf  ;;  %v1118_v35 = vand.u32 2147483648, %v2856_v49 }
  0xf5   : > { %v2905_v34 = vmax.f32 %v997_v28, 0.0  ;;  %v1004_v53 = vadd.f32 %v988_v29, %v2803_v37  ;;  %v989_v4 = vsub.f32 %v2818_v5, %v897_v30  ;;  %2592 = vrsqrt.f32 %v2895_v26 }
  0xf6   : > { %v1030_v40 = vmul.f32 %v2575_v31, %v2834_v27  ;;  %v1025_v41 = vsel %vm1024_vm7, %v2829_v18, %v1023_v32  ;;  %vm1117_vm12 = vcmp.eq.f32.partialorder %v2856_v49, 0.0  ;;  %vm1108_vm13 = vcmp.eq.f32.partialorder %v2845_v39, inf  ;;  %v2577_v42 = vpop.eup %2576 }
  0xf7   : > { %2594 = vrsqrt.f32 %v2905_v34  ;;  %v1005_v43 = vadd.f32 %v989_v4, %v2803_v37  ;;  %v1028_v5 = vsel %vm1026_vm8, %v1027_v33, %v1025_v41  ;;  %vm1110_vm14 = vcmp.eq.f32.partialorder %v2845_v39, 0.0  ;;  %v2579_v44 = vpop.eup %2578 }
  0xf8   : > { %v2922_v45 = vmax.f32 %v1004_v53, 0.0  ;;  %v1079_v46 = vmul.f32 %v2577_v42, %v2843_v38  ;;  %v1032_v47 = vsel %vm1031_vm3, %v2834_v27, %v1030_v40  ;;  %v1134_v50 = vmul.f32 5.0, %v1028_v5 }
  0xf9   : > { %v2581_v52 = vpop.eup %2580  ;;  %v2928_v54 = vmax.f32 %v1005_v43, 0.0  ;;  %v1035_v37 = vsel %vm1033_vm4, %v1034_v21, %v1032_v47  ;;  %v1107_v18 = vmul.f32 %v2579_v44, %v2845_v39  ;;  %v1111_v55 = vand.u32 2147483648, %v2845_v39 }
  0xfa   : > { %v2583_v56 = vpop.eup %2582  ;;  %v1086_v61 = vmul.f32 %v2581_v52, %v2854_v48  ;;  %v1081_v62 = vsel %vm1080_vm5, %v2843_v38, %v1079_v46  ;;  %v1135_v2 = vmul.f32 5.0, %v1035_v37  ;;  %v1150_v6 = vsub.f32 1.0, %v1134_v50 }
  0xfb   : > { %2596 = vrsqrt.f32 %v2928_v54  ;;  %v1084_v27 = vsel %vm1082_vm6, %v1083_v3, %v1081_v62  ;;  %v1114_v10 = vmul.f32 %v2583_v56, %v2856_v49  ;;  %v1109_v11 = vsel %vm1108_vm13, %v2845_v39, %v1107_v18  ;;  %v2945_v12 = vpop.eup %2584 }
  0xfc   : > { %v1088_v13 = vsel %vm1087_vm9, %v2854_v48, %v1086_v61  ;;  %v1142_v16 = vmul.f32 5.0, %v1084_v27  ;;  %v1151_v17 = vsub.f32 1.0, %v1135_v2  ;;  %v1166_v20 = vmax.f32 %v1150_v6, 0.0  ;;  %v2587_v21 = vpop.eup %2586 }
  0xfd   : > { %v1091_v38 = vsel %vm1089_vm10, %v1090_v15, %v1088_v13  ;;  %v1116_v3 = vsel %vm1115_vm11, %v2856_v49, %v1114_v10  ;;  %v1112_v22 = vsel %vm1110_vm14, %v1111_v55, %v1109_v11  ;;  %2598 = vrsqrt.f32 %v2871_v1 }
  0xfe   : > { %v1143_v25 = vmul.f32 5.0, %v1091_v38  ;;  %v1158_v28 = vsub.f32 1.0, %v1142_v16  ;;  %v1167_v29 = vmax.f32 %v1151_v17, 0.0  ;;  %v1223_v30 = vmul.f32 %v2825_v14, %v1166_v20  ;;  %v2589_v31 = vpop.eup %2588 }
  0xff   : > { %2600 = vrsqrt.f32 %v2922_v45  ;;  %v1119_v48 = vsel %vm1117_vm12, %v1118_v35, %v1116_v3  ;;  %v1146_v15 = vmul.f32 5.0, %v1112_v22  ;;  %v1209_v32 = vsub.s32 6, %v2799_v24  ;;  %v395_v24 = vld [vmem:[%s3676_s6 + $0xf0] sm:$0xff] }
 0x100   : > { %v1159_v33 = vsub.f32 1.0, %v1143_v25  ;;  %v1174_v39 = vmax.f32 %v1158_v28, 0.0  ;;  %v1224_v53 = vmul.f32 %v2822_v9, %v1167_v29  ;;  %v1147_v4 = vmul.f32 5.0, %v1119_v48  ;;  %v3028_v29 = vld [vmem:[%s3674_s4 + $0x8] sm:$0xff] }
 0x101   : > { %v2591_v40 = vpop.eup %2590  ;;  %v1162_v41 = vsub.f32 1.0, %v1146_v15  ;;  %2602 = vrsqrt.f32 %v2869_v63  ;;  %v2970_v42 = vrot.slane %v2812_v58, %v1197_v57  ;;  %v2975_v49 = vrot.slane %v2812_v58, %v1193_v59 }
 0x102   : > { %v1175_v35 = vmax.f32 %v1159_v33, 0.0  ;;  %v1231_v43 = vmul.f32 %v2825_v14, %v1174_v39  ;;  %v1163_v5 = vsub.f32 1.0, %v1147_v4  ;;  %v1062_v44 = vand.u32 2147483648, %v2871_v1  ;;  %v2979_v46 = vpop.eup %2592 }
 0x103   : > { %v1178_v47 = vmax.f32 %v1162_v41, 0.0  ;;  %v1055_v50 = vand.u32 2147483648, %v2869_v63  ;;  %v1100_v52 = vmul.f32 %v2591_v40, %v2890_v23  ;;  %vm1101_vm1 = vcmp.eq.f32.partialorder %v2890_v23, inf }
 0x104   : > { %v2984_v57 = vpop.eup %2594  ;;  %v1232_v59 = vmul.f32 %v2822_v9, %v1175_v35  ;;  %v1179_v37 = vmax.f32 %v1163_v5, 0.0  ;;  %vm1059_vm2 = vcmp.eq.f32.partialorder %v2871_v1, inf  ;;  %vm1103_vm3 = vcmp.eq.f32.partialorder %v2890_v23, 0.0 }
 0x105   : > { %v1104_v14 = vand.u32 2147483648, %v2890_v23  ;;  %v1235_v18 = vmul.f32 %v2832_v19, %v1178_v47  ;;  %vm1061_vm4 = vcmp.eq.f32.partialorder %v2871_v1, 0.0  ;;  %v1102_v55 = vsel %vm1101_vm1, %v2890_v23, %v1100_v52  ;;  %v3004_v23 = vld [vmem:[%s3674_s4] sm:$0xff] }
 0x106   : > { %v1093_v56 = vmul.f32 %v2589_v31, %v2876_v8  ;;  %vm1094_vm5 = vcmp.eq.f32.partialorder %v2876_v8, inf  ;;  %2278 = vmatprep.subr.msk.mxu0 %vm1252_vm15, %v1232_v59  ;;  %v1236_v9 = vmul.f32 %v2841_v36, %v1179_v37  ;;  %vm1052_vm6 = vcmp.eq.f32.partialorder %v2869_v63, inf }
 0x107   : > { %v1105_v61 = vsel %vm1103_vm3, %v1104_v14, %v1102_v55  ;;  %vm1096_vm7 = vcmp.eq.f32.partialorder %v2876_v8, 0.0  ;;  %v1097_v62 = vand.u32 2147483648, %v2876_v8  ;;  %2279 = vmatpush1.msk.msra.mxu0 %vm1252_vm15, %v1231_v43  ;;  %v1044_v27 = vmul.f32 %v2587_v21, %v2866_v60 }
 0x108   : > { %v1145_v2 = vmul.f32 5.0, %v1105_v61  ;;  %v1095_v6 = vsel %vm1094_vm5, %v2876_v8, %v1093_v56  ;;  %vm1045_vm8 = vcmp.eq.f32.partialorder %v2866_v60, inf  ;;  %v2597_v10 = vpop.eup %2596  ;;  %1307 = vmatprep.subr.mxu0 %v1224_v53  ;;  %vm1047_vm9 = vcmp.eq.f32.partialorder %v2866_v60, 0.0 }
 0x109   : > { %v1098_v11 = vsel %vm1096_vm7, %v1097_v62, %v1095_v6  ;;  %v1048_v13 = vand.u32 2147483648, %v2866_v60  ;;  %v1037_v16 = vmul.f32 %v2945_v12, %v2859_v51  ;;  %1308 = vmatpush1.msra.mxu0 %v1223_v30  ;;  %vm1054_vm10 = vcmp.eq.f32.partialorder %v2869_v63, 0.0 }
 0x10a   : > { %v1161_v17 = vsub.f32 1.0, %v1145_v2  ;;  %v1144_v20 = vmul.f32 5.0, %v1098_v11  ;;  %v1046_v8 = vsel %vm1045_vm8, %v2866_v60, %v1044_v27  ;;  %vm1038_vm11 = vcmp.eq.f32.partialorder %v2859_v51, inf  ;;  %v2599_v21 = vpop.eup %2598  ;;  %2280 = vmatmul.mubr.msk.f32.vlgmr.msra.gmra.mxu0 %vm1239_vm0, %v3004_v23  ;;  %2290 = vmatprep.subr.msk.mxu0 %vm1252_vm15, %v1236_v9 }
 0x10b   : > { %v1049_v38 = vsel %vm1047_vm9, %v1048_v13, %v1046_v8  ;;  %v1039_v3 = vsel %vm1038_vm11, %v2859_v51, %v1037_v16  ;;  %vm1040_vm12 = vcmp.eq.f32.partialorder %v2859_v51, 0.0  ;;  %v1041_v12 = vand.u32 2147483648, %v2859_v51  ;;  %2291 = vmatpush1.msk.msra.mxu0 %vm1252_vm15, %v1235_v18  ;;  %1347 = vmatprep.mubr.f32.mxu0 %v2666_v0 }
 0x10c   : > { %v1058_v22 = vmul.f32 %v2599_v21, %v2871_v1  ;;  %v1177_v60 = vmax.f32 %v1161_v17, 0.0  ;;  %v1160_v25 = vsub.f32 1.0, %v1144_v20  ;;  %v1137_v28 = vmul.f32 5.0, %v1049_v38  ;;  %v2601_v30 = vpop.eup %2600 }
 0x10d   : > { %v1042_v31 = vsel %vm1040_vm12, %v1041_v12, %v1039_v3  ;;  %v1128_v48 = vmul.f32 %v2597_v10, %v2928_v54  ;;  %vm1129_vm13 = vcmp.eq.f32.partialorder %v2928_v54, inf  ;;  %vm1131_vm14 = vcmp.eq.f32.partialorder %v2928_v54, 0.0 }
 0x10e   : > { %v1060_v51 = vsel %vm1059_vm2, %v2871_v1, %v1058_v22  ;;  %v1234_v15 = vmul.f32 %v2970_v42, %v1177_v60  ;;  %v1176_v33 = vmax.f32 %v1160_v25, 0.0  ;;  %v1153_v39 = vsub.f32 1.0, %v1137_v28  ;;  %v2603_v53 = vpop.eup %2602  ;;  %2281 = vmatmul.mubr.msk.f32.gmra.mxu0 %vm1239_vm0, %v3028_v29  ;;  %v3052_v1 = vld [vmem:[%s3674_s4 + $0x10] sm:$0xff]  ;;  %v396_v25 = vld [vmem:[%s3676_s6 + $0xf8] sm:$0xff] }
 0x10f   : > { %v1063_v4 = vsel %vm1061_vm4, %v1062_v44, %v1060_v51  ;;  %v1136_v40 = vmul.f32 5.0, %v1042_v31  ;;  %v1130_v41 = vsel %vm1129_vm13, %v2928_v54, %v1128_v48  ;;  %v1132_v35 = vand.u32 2147483648, %v2928_v54  ;;  %1353 = vmatprep.mubr.f32.mxu0 %v2666_v0  ;;  %v379_v51 = vld [vmem:[%s3676_s6 + $0x70] sm:$0xff] }
 0x110   : > { %v1139_v43 = vmul.f32 5.0, %v1063_v4  ;;  %v1051_v5 = vmul.f32 %v2603_v53, %v2869_v63  ;;  %2284 = vmatprep.subr.msk.mxu1 %vm1252_vm15, %v1234_v15  ;;  %v1233_v47 = vmul.f32 %v2975_v49, %v1176_v33  ;;  %v1169_v52 = vmax.f32 %v1153_v39, 0.0  ;;  %v394_v15 = vld [vmem:[%s3676_s6 + $0xe8] sm:$0xff]  ;;  %v428_v53 = vld [vmem:[%s3676_s6 + $0x1f8] sm:$0xff]  ;;  %v393_v4 = vld [vmem:[%s3676_s6 + $0xe0] sm:$0xff] }
 0x111   : > { %v1152_v44 = vsub.f32 1.0, %v1136_v40  ;;  %v1133_v59 = vsel %vm1131_vm14, %v1132_v35, %v1130_v41  ;;  %v1121_v37 = vmul.f32 %v2601_v30, %v2922_v45  ;;  %vm1122_vm1 = vcmp.eq.f32.partialorder %v2922_v45, inf  ;;  %v378_v39 = vld [vmem:[%s3676_s6 + $0x68] sm:$0xff]  ;;  %v377_v40 = vld [vmem:[%s3676_s6 + $0x60] sm:$0xff]  ;;  %v392_v41 = vld [vmem:[%s3676_s6 + $0xd8] sm:$0xff] }
 0x112   : > { %v1155_v14 = vsub.f32 1.0, %v1139_v43  ;;  %v1053_v18 = vsel %vm1052_vm6, %v2869_v63, %v1051_v5  ;;  %2285 = vmatpush1.msk.msra.mxu1 %vm1252_vm15, %v1233_v47  ;;  %v1226_v55 = vmul.f32 %v2970_v42, %v1169_v52  ;;  %v1149_v56 = vmul.f32 5.0, %v1133_v59  ;;  %2282 = vmatmul.mubr.msk.f32.gmra.mxu0 %vm1239_vm0, %v3052_v1  ;;  %v3078_v63 = vld [vmem:[%s3674_s4 + $0x18] sm:$0xff]  ;;  %v427_v5 = vld [vmem:[%s3676_s6 + $0x1f0] sm:$0xff]  ;;  %v426_v59 = vld [vmem:[%s3676_s6 + $0x1e8] sm:$0xff] }
 0x113   : > { %v1056_v54 = vsel %vm1054_vm10, %v1055_v50, %v1053_v18  ;;  %v1168_v9 = vmax.f32 %v1152_v44, 0.0  ;;  %v1214_v61 = vrot.slane %v2812_v58, %v1213_v7  ;;  %v1123_v62 = vsel %vm1122_vm1, %v2922_v45, %v1121_v37  ;;  %1359 = vmatprep.mubr.f32.mxu0 %v2666_v0  ;;  %v412_v35 = vld [vmem:[%s3676_s6 + $0x178] sm:$0xff]  ;;  %v391_v47 = vld [vmem:[%s3676_s6 + $0xd0] sm:$0xff]  ;;  %v390_v44 = vld [vmem:[%s3676_s6 + $0xc8] sm:$0xff] }
 0x114   : > { %v1171_v2 = vmax.f32 %v1155_v14, 0.0  ;;  %v1138_v6 = vmul.f32 5.0, %v1056_v54  ;;  %1396 = vmatprep.subr.mxu1 %v1226_v55  ;;  %v1165_v42 = vsub.f32 1.0, %v1149_v56  ;;  %v1125_v27 = vand.u32 2147483648, %v2922_v45  ;;  %v376_v43 = vld [vmem:[%s3676_s6 + $0x58] sm:$0xff]  ;;  %v411_v52 = vld [vmem:[%s3676_s6 + $0x170] sm:$0xff] }
 0x115   : > { %v1225_v7 = vmul.f32 %v2975_v49, %v1168_v9  ;;  %vm1124_vm2 = vcmp.eq.f32.partialorder %v2922_v45, 0.0  ;;  %v1072_v50 = vmul.f32 %v2984_v57, %v2905_v34  ;;  %vm1073_vm3 = vcmp.eq.f32.partialorder %v2905_v34, inf  ;;  %v374_v37 = vld [vmem:[%s3676_s6 + $0x48] sm:$0xff]  ;;  %v389_v14 = vld [vmem:[%s3676_s6 + $0xc0] sm:$0xff]  ;;  %v388_v54 = vld [vmem:[%s3676_s6 + $0xb8] sm:$0xff] }
 0x116   : > { %v1228_v10 = vmul.f32 %v2841_v36, %v1171_v2  ;;  %v1154_v11 = vsub.f32 1.0, %v1138_v6  ;;  %v1181_v13 = vmax.f32 %v1165_v42, 0.0  ;;  %v1126_v16 = vsel %vm1124_vm2, %v1125_v27, %v1123_v62  ;;  %2283 = vmatmul.mubr.msk.f32.gmra.mxu0 %vm1239_vm0, %v3078_v63  ;;  %v425_v18 = vld [vmem:[%s3676_s6 + $0x1e0] sm:$0xff]  ;;  %v424_v9 = vld [vmem:[%s3676_s6 + $0x1d8] sm:$0xff]  ;;  %v423_v62 = vld [vmem:[%s3676_s6 + $0x1d0] sm:$0xff] }
 0x117   : > { %1397 = vmatpush1.msra.mxu1 %v1225_v7  ;;  %v1148_v17 = vmul.f32 5.0, %v1126_v16  ;;  %v1074_v20 = vsel %vm1073_vm3, %v2905_v34, %v1072_v50  ;;  %v1076_v8 = vand.u32 2147483648, %v2905_v34  ;;  %v1065_v49 = vmul.f32 %v2979_v46, %v2895_v26  ;;  %1519 = vmatprep.mubr.f32.mxu0 %v2666_v0  ;;  %v373_v55 = vld [vmem:[%s3676_s6 + $0x40] sm:$0xff]  ;;  %v371_v2 = vld [vmem:[%s3676_s6 + $0x30] sm:$0xff]  ;;  %v386_v42 = vld [vmem:[%s3676_s6 + $0xa8] sm:$0xff] }
 0x118   : > { %1485 = vmatprep.subr.mxu0 %v1228_v10  ;;  %v1170_v45 = vmax.f32 %v1154_v11, 0.0  ;;  %2286 = vmatmul.mubr.msk.f32.vlgmr.msra.gmra.mxu1 %vm1239_vm0, %v3004_v23  ;;  %v1238_v36 = vmul.f32 %v1214_v61, %v1181_v13  ;;  %vm1075_vm4 = vcmp.eq.f32.partialorder %v2905_v34, 0.0  ;;  %vm1066_vm5 = vcmp.eq.f32.partialorder %v2895_v26, inf  ;;  %v409_v56 = vld [vmem:[%s3676_s6 + $0x160] sm:$0xff]  ;;  %v407_v6 = vld [vmem:[%s3676_s6 + $0x150] sm:$0xff]  ;;  %v422_v27 = vld [vmem:[%s3676_s6 + $0x1c8] sm:$0xff] }
 0x119   : > { %v1164_v57 = vsub.f32 1.0, %v1148_v17  ;;  %v1077_v21 = vsel %vm1075_vm4, %v1076_v8, %v1074_v20  ;;  %v1067_v38 = vsel %vm1066_vm5, %v2895_v26, %v1065_v49  ;;  %v1069_v3 = vand.u32 2147483648, %v2895_v26  ;;  %1436 = vmatprep.mubr.f32.mxu1 %v2666_v0  ;;  %v406_v7 = vld [vmem:[%s3676_s6 + $0x148] sm:$0xff]  ;;  %v385_v50 = vld [vmem:[%s3676_s6 + $0xa0] sm:$0xff]  ;;  %v384_v16 = vld [vmem:[%s3676_s6 + $0x98] sm:$0xff] }
 0x11a   : > { %v1227_v46 = vmul.f32 %v2832_v19, %v1170_v45  ;;  %2296 = vmatprep.subr.msk.mxu1 %vm1252_vm15, %v1238_v36  ;;  %v1141_v12 = vmul.f32 5.0, %v1077_v21  ;;  %vm1068_vm6 = vcmp.eq.f32.partialorder %v2895_v26, 0.0  ;;  %v1210_v22 = vrot.slane %v2812_v58, %v1209_v32  ;;  %v380_v19 = vld [vmem:[%s3676_s6 + $0x78] sm:$0xff]  ;;  %v421_v10 = vld [vmem:[%s3676_s6 + $0x1c0] sm:$0xff]  ;;  %v383_v49 = vld [vmem:[%s3676_s6 + $0x90] sm:$0xff] }
 0x11b   : > { %v1180_v34 = vmax.f32 %v1164_v57, 0.0  ;;  %v1070_v60 = vsel %vm1068_vm6, %v1069_v3, %v1067_v38  ;;  %v369_v11 = vld [vmem:[%s3676_s6 + $0x20] sm:$0xff]  ;;  %v420_v17 = vld [vmem:[%s3676_s6 + $0x1b8] sm:$0xff]  ;;  %v419_v45 = vld [vmem:[%s3676_s6 + $0x1b0] sm:$0xff] }
 0x11c   : > { %1486 = vmatpush1.msra.mxu0 %v1227_v46  ;;  %v1157_v28 = vsub.f32 1.0, %v1141_v12  ;;  %v1140_v30 = vmul.f32 5.0, %v1070_v60  ;;  %2287 = vmatmul.mubr.msk.f32.gmra.mxu1 %vm1239_vm0, %v3028_v29  ;;  %v405_v13 = vld [vmem:[%s3676_s6 + $0x140] sm:$0xff]  ;;  %v368_v20 = vld [vmem:[%s3676_s6 + $0x18] sm:$0xff]  ;;  %v367_v36 = vld [vmem:[%s3676_s6 + $0x10] sm:$0xff] }
 0x11d   : > { %v1237_v26 = vmul.f32 %v1210_v22, %v1180_v34  ;;  %1442 = vmatprep.mubr.f32.mxu1 %v2666_v0  ;;  %2292 = vmatmul.mubr.msk.f32.vlgmr.msra.gmra.mxu0 %vm1239_vm0, %v3004_v23  ;;  %v404_v8 = vld [vmem:[%s3676_s6 + $0x138] sm:$0xff]  ;;  %v403_v57 = vld [vmem:[%s3676_s6 + $0x130] sm:$0xff]  ;;  %v382_v21 = vld [vmem:[%s3676_s6 + $0x88] sm:$0xff] }
 0x11e   : > { %v1173_v58 = vmax.f32 %v1157_v28, 0.0  ;;  %v1156_v32 = vsub.f32 1.0, %v1140_v30  ;;  %1525 = vmatprep.mubr.f32.mxu0 %v2666_v0  ;;  %2318 = vmatprep.subr.mxu0 %v396_v25  ;;  %v418_v38 = vld [vmem:[%s3676_s6 + $0x1a8] sm:$0xff]  ;;  %v381_v12 = vld [vmem:[%s3676_s6 + $0x80] sm:$0xff]  ;;  %v416_v25 = vld [vmem:[%s3676_s6 + $0x198] sm:$0xff] }
 0x11f   : > { %2297 = vmatpush1.msk.msra.mxu1 %vm1252_vm15, %v1237_v26  ;;  %2319 = vmatpush3.msra.mxu0 %v380_v19  ;;  %v366_v3 = vld [vmem:[%s3676_s6 + $0x8] sm:$0xff]  ;;  %v417_v34 = vld [vmem:[%s3676_s6 + $0x1a0] sm:$0xff]  ;;  %v460_v28 = vld [vmem:[%s3676_s6 + $0x2f8] sm:$0xff]  ;;  %vm2005_vm15 = vcmask 261120  }
 0x120   : > { %v1230_v31 = vmul.f32 %v1214_v61, %v1173_v58  ;;  %v1172_v48 = vmax.f32 %v1156_v32, 0.0  ;;  %2288 = vmatmul.mubr.msk.f32.gmra.mxu1 %vm1239_vm0, %v3052_v1  ;;  %2320 = vmatprep.subr.mxu0 %v395_v24  ;;  %v408_v61 = vld [vmem:[%s3676_s6 + $0x158] sm:$0xff]  ;;  %v402_v46 = vld [vmem:[%s3676_s6 + $0x128] sm:$0xff]  ;;  %v401_v60 = vld [vmem:[%s3676_s6 + $0x120] sm:$0xff] }
 0x121   : > { %1448 = vmatprep.mubr.f32.mxu1 %v2666_v0  ;;  %2293 = vmatmul.mubr.msk.f32.gmra.mxu0 %vm1239_vm0, %v3028_v29  ;;  %v400_v30 = vld [vmem:[%s3676_s6 + $0x118] sm:$0xff]  ;;  %v415_v19 = vld [vmem:[%s3676_s6 + $0x190] sm:$0xff]  ;;  %v414_v24 = vld [vmem:[%s3676_s6 + $0x188] sm:$0xff] }
 0x122   : > { %1574 = vmatprep.subr.mxu1 %v1230_v31  ;;  %v1229_v33 = vmul.f32 %v1210_v22, %v1172_v48  ;;  %1531 = vmatprep.mubr.f32.mxu0 %v2666_v0  ;;  %v365_v22 = vld [vmem:[%s3676_s6] sm:$0xff]  ;;  %v399_v26 = vld [vmem:[%s3676_s6 + $0x110] sm:$0xff]  ;;  %v398_v58 = vld [vmem:[%s3676_s6 + $0x108] sm:$0xff] }
 0x123   : > { %2321 = vmatpush3.msra.mxu0 %v379_v51  ;;  %v413_v32 = vld [vmem:[%s3676_s6 + $0x180] sm:$0xff]  ;;  %v492_v48 = vld [vmem:[%s3676_s6 + $0x3f8] sm:$0xff] }
 0x124   : > { %1575 = vmatpush1.msra.mxu1 %v1229_v33  ;;  %2322 = vmatprep.subr.mxu0 %v394_v15  ;;  %v397_v31 = vld [vmem:[%s3676_s6 + $0x100] sm:$0xff]  ;;  %v319_v33 = vld [vmem:[%s3340_s9 + $0x8] sm:$0xff] }
 0x125   : > { %2289 = vmatmul.mubr.msk.f32.gmra.mxu1 %vm1239_vm0, %v3078_v63  ;;  %2294 = vmatmul.mubr.msk.f32.gmra.mxu0 %vm1239_vm0, %v3052_v1  ;;  %v318_v51 = vld [vmem:[%s3340_s9] sm:$0xff] }
 0x126   : > { %1608 = vmatprep.mubr.f32.mxu1 %v2666_v0  ;;  %1537 = vmatprep.mubr.f32.mxu0 %v2666_v0 }
 0x127   : > { %2323 = vmatpush3.msra.mxu0 %v378_v39  ;;  %2362 = vmatprep.subr.mxu1 %v428_v53 }
 0x128   : > { %2324 = vmatprep.subr.mxu0 %v393_v4 }
 0x129   : > { %2298 = vmatmul.mubr.msk.f32.vlgmr.msra.gmra.mxu1 %vm1239_vm0, %v3004_v23  ;;  %2295 = vmatmul.mubr.msk.f32.gmra.mxu0 %vm1239_vm0, %v3078_v63  ;;  %v375_v23 = vld [vmem:[%s3676_s6 + $0x50] sm:$0xff] }
 0x12a   : > { %1614 = vmatprep.mubr.f32.mxu1 %v2666_v0  ;;  %2325 = vmatpush3.msra.mxu0 %v377_v40  ;;  %v326_v40 = vld [vmem:[%s3340_s9 + $0x40] sm:$0xff] }
 0x12b   : > { %2326 = vmatprep.subr.mxu0 %v392_v41  ;;  %2363 = vmatpush3.msra.mxu1 %v412_v35  ;;  %v444_v41 = vld [vmem:[%s3676_s6 + $0x278] sm:$0xff] }
 0x12c   : > { %2327 = vmatpush3.msra.mxu0 %v376_v43  ;;  %2364 = vmatprep.subr.mxu1 %v427_v5  ;;  %v327_v43 = vld [vmem:[%s3340_s9 + $0x48] sm:$0xff]  ;;  %v459_v5 = vld [vmem:[%s3676_s6 + $0x2f0] sm:$0xff] }
 0x12d   : > { %2299 = vmatmul.mubr.msk.f32.gmra.mxu1 %vm1239_vm0, %v3028_v29  ;;  %2328 = vmatprep.subr.mxu0 %v391_v47  ;;  %v410_v29 = vld [vmem:[%s3676_s6 + $0x168] sm:$0xff]  ;;  %v443_v47 = vld [vmem:[%s3676_s6 + $0x270] sm:$0xff] }
 0x12e   : > { %1620 = vmatprep.mubr.f32.mxu1 %v2666_v0  ;;  %2329 = vmatpush3.msra.mxu0 %v375_v23 }
 0x12f   : > { %2365 = vmatpush3.msra.mxu1 %v411_v52  ;;  %2330 = vmatprep.subr.mxu0 %v390_v44  ;;  %v458_v44 = vld [vmem:[%s3676_s6 + $0x2e8] sm:$0xff] }
 0x130   : > { %2366 = vmatprep.subr.mxu1 %v426_v59  ;;  %2331 = vmatpush3.msra.mxu0 %v374_v37  ;;  %v334_v37 = vld [vmem:[%s3340_s9 + $0x80] sm:$0xff] }
 0x131   : > { %2300 = vmatmul.mubr.msk.f32.gmra.mxu1 %vm1239_vm0, %v3052_v1  ;;  %2332 = vmatprep.subr.mxu0 %v389_v14  ;;  %v372_v1 = vld [vmem:[%s3676_s6 + $0x38] sm:$0xff]  ;;  %v442_v14 = vld [vmem:[%s3676_s6 + $0x268] sm:$0xff] }
 0x132   : > { %1626 = vmatprep.mubr.f32.mxu1 %v2666_v0  ;;  %2367 = vmatpush3.msra.mxu1 %v410_v29  ;;  %v387_v0 = vld [vmem:[%s3676_s6 + $0xb0] sm:$0xff] }
 0x133   : > { %2368 = vmatprep.subr.mxu1 %v425_v18  ;;  %2333 = vmatpush3.msra.mxu0 %v373_v55  ;;  %v335_v18 = vld [vmem:[%s3340_s9 + $0x88] sm:$0xff]  ;;  %v457_v55 = vld [vmem:[%s3676_s6 + $0x2e0] sm:$0xff] }
 0x134   : > { %2369 = vmatpush3.msra.mxu1 %v409_v56  ;;  %2334 = vmatprep.subr.mxu0 %v388_v54  ;;  %v441_v56 = vld [vmem:[%s3676_s6 + $0x260] sm:$0xff] }
 0x135   : > { %2301 = vmatmul.mubr.msk.f32.gmra.mxu1 %vm1239_vm0, %v3078_v63  ;;  %2370 = vmatprep.subr.mxu1 %v424_v9  ;;  %v370_v63 = vld [vmem:[%s3676_s6 + $0x28] sm:$0xff]  ;;  %vm2135_vm0 = vcmask 523264  }
 0x136   : > { %2335 = vmatpush3.msra.mxu0 %v372_v1  ;;  %2371 = vmatpush3.msra.mxu1 %v408_v61  ;;  %v456_v1 = vld [vmem:[%s3676_s6 + $0x2d8] sm:$0xff] }
 0x137   : > { %2336 = vmatprep.subr.mxu0 %v387_v0  ;;  %2372 = vmatprep.subr.mxu1 %v423_v62  ;;  %v440_v0 = vld [vmem:[%s3676_s6 + $0x258] sm:$0xff] }
 0x138   : > { %2337 = vmatpush3.msra.mxu0 %v371_v2  ;;  %2373 = vmatpush3.msra.mxu1 %v407_v6  ;;  %v343_v2 = vld [vmem:[%s3340_s9 + $0xc8] sm:$0xff] }
 0x139   : > { %2338 = vmatprep.subr.mxu0 %v386_v42  ;;  %2374 = vmatprep.subr.mxu1 %v422_v27  ;;  %v321_v42 = vld [vmem:[%s3340_s9 + $0x18] sm:$0xff]  ;;  %v455_v27 = vld [vmem:[%s3676_s6 + $0x2d0] sm:$0xff] }
 0x13a   : > { %2339 = vmatpush3.msra.mxu0 %v370_v63  ;;  %2375 = vmatpush3.msra.mxu1 %v406_v7  ;;  %v320_v63 = vld [vmem:[%s3340_s9 + $0x10] sm:$0xff] }
 0x13b   : > { %2340 = vmatprep.subr.mxu0 %v385_v50  ;;  %2376 = vmatprep.subr.mxu1 %v421_v10  ;;  %v439_v7 = vld [vmem:[%s3676_s6 + $0x250] sm:$0xff] }
 0x13c   : > { %2341 = vmatpush3.msra.mxu0 %v369_v11  ;;  %2377 = vmatpush3.msra.mxu1 %v405_v13  ;;  %v454_v11 = vld [vmem:[%s3676_s6 + $0x2c8] sm:$0xff] }
 0x13d   : > { %2342 = vmatprep.subr.mxu0 %v384_v16  ;;  %2378 = vmatprep.subr.mxu1 %v420_v17  ;;  %v438_v17 = vld [vmem:[%s3676_s6 + $0x248] sm:$0xff] }
 0x13e   : > { %2343 = vmatpush3.msra.mxu0 %v368_v20  ;;  %2379 = vmatpush3.msra.mxu1 %v404_v8  ;;  %v476_v8 = vld [vmem:[%s3676_s6 + $0x378] sm:$0xff] }
 0x13f   : > { %2344 = vmatprep.subr.mxu0 %v383_v49  ;;  %2380 = vmatprep.subr.mxu1 %v419_v45  ;;  %v453_v49 = vld [vmem:[%s3676_s6 + $0x2c0] sm:$0xff] }
 0x140   : > { %2345 = vmatpush3.msra.mxu0 %v367_v36  ;;  %2381 = vmatpush3.msra.mxu1 %v403_v57  ;;  %v491_v36 = vld [vmem:[%s3676_s6 + $0x3f0] sm:$0xff]  ;;  %v437_v57 = vld [vmem:[%s3676_s6 + $0x240] sm:$0xff] }
 0x141   : > { %2346 = vmatprep.subr.mxu0 %v382_v21  ;;  %2382 = vmatprep.subr.mxu1 %v418_v38  ;;  %v475_v38 = vld [vmem:[%s3676_s6 + $0x370] sm:$0xff] }
 0x142   : > { %2347 = vmatpush3.msra.mxu0 %v366_v3  ;;  %2383 = vmatpush3.msra.mxu1 %v402_v46  ;;  %v452_v3 = vld [vmem:[%s3676_s6 + $0x2b8] sm:$0xff] }
 0x143   : > { %2348 = vmatprep.subr.mxu0 %v381_v12  ;;  %2384 = vmatprep.subr.mxu1 %v417_v34  ;;  %v329_v46 = vld [vmem:[%s3340_s9 + $0x58] sm:$0xff]  ;;  %v490_v34 = vld [vmem:[%s3676_s6 + $0x3e8] sm:$0xff] }
 0x144   : > { %2349 = vmatpush3.msra.mxu0 %v365_v22  ;;  %2385 = vmatpush3.msra.mxu1 %v401_v60  ;;  %v436_v22 = vld [vmem:[%s3676_s6 + $0x238] sm:$0xff]  ;;  %v474_v60 = vld [vmem:[%s3676_s6 + $0x368] sm:$0xff] }
 0x145   : > { %2386 = vmatprep.subr.mxu1 %v416_v25  ;;  %2406 = vmatprep.subr.mxu0 %v460_v28  ;;  %v451_v25 = vld [vmem:[%s3676_s6 + $0x2b0] sm:$0xff] }
 0x146   : > { %2387 = vmatpush3.msra.mxu1 %v400_v30  ;;  %v489_v30 = vld [vmem:[%s3676_s6 + $0x3e0] sm:$0xff] }
 0x147   : > { %2388 = vmatprep.subr.mxu1 %v415_v19  ;;  %v328_v19 = vld [vmem:[%s3340_s9 + $0x50] sm:$0xff] }
 0x148   : > { %2389 = vmatpush3.msra.mxu1 %v399_v26 }
 0x149   : > { %2390 = vmatprep.subr.mxu1 %v414_v24  ;;  %v435_v24 = vld [vmem:[%s3676_s6 + $0x230] sm:$0xff] }
 0x14a   : > { %2391 = vmatpush3.msra.mxu1 %v398_v58 }
 0x14b   : > { %2392 = vmatprep.subr.mxu1 %v413_v32  ;;  %v473_v32 = vld [vmem:[%s3676_s6 + $0x360] sm:$0xff] }
 0x14c   : > { %2393 = vmatpush3.msra.mxu1 %v397_v31 }
 0x14d   : > { %2450 = vmatprep.subr.mxu1 %v492_v48  ;;  %v488_v48 = vld [vmem:[%s3676_s6 + $0x3d8] sm:$0xff] }
 0x1ca   : > { %v1343_v15 = vpop.f32.mrf.mxu0 }
 0x1cb   : > { %v1633_v39 = vmul.f32 %v1343_v15, %v318_v51  ;;  %v450_v51 = vld [vmem:[%s3676_s6 + $0x2a8] sm:$0xff] }
 0x1cc   : > { %v1345_v53 = vpop.f32.mrf.mxu0 }
 0x1cd   : > { %v1634_v4 = vmul.f32 %v1345_v53, %v319_v33  ;;  %v472_v33 = vld [vmem:[%s3676_s6 + $0x358] sm:$0xff]  ;;  %v434_v53 = vld [vmem:[%s3676_s6 + $0x228] sm:$0xff] }
 0x1ce   : > { %v1349_v35 = vpop.f32.mrf.mxu0 }
 0x1cf   : > { %1729 = vmatprep.mubr.f32.mxu0 %v1634_v4  ;;  %v1641_v23 = vmul.f32 %v1349_v35, %v326_v40  ;;  %v487_v4 = vld [vmem:[%s3676_s6 + $0x3d0] sm:$0xff] }
 0x1d0   : > { %1730 = vmatmul.mubr.f32.vlgmr.msra.gmra.mxu0 %v1633_v39  ;;  %v1351_v52 = vpop.f32.mrf.mxu0  ;;  %v337_v39 = vld [vmem:[%s3340_s9 + $0x98] sm:$0xff]  ;;  %v471_v35 = vld [vmem:[%s3676_s6 + $0x350] sm:$0xff] }
 0x1d1   : > { %2407 = vmatpush3.msra.mxu0 %v444_v41  ;;  %v1642_v59 = vmul.f32 %v1351_v52, %v327_v43  ;;  %v449_v43 = vld [vmem:[%s3676_s6 + $0x2a0] sm:$0xff] }
 0x1d2   : > { %2408 = vmatprep.subr.mxu0 %v459_v5  ;;  %v1355_v29 = vpop.f32.mrf.mxu0  ;;  %v336_v5 = vld [vmem:[%s3340_s9 + $0x90] sm:$0xff]  ;;  %v433_v52 = vld [vmem:[%s3676_s6 + $0x220] sm:$0xff] }
 0x1d3   : > { %2409 = vmatpush3.msra.mxu0 %v443_v47  ;;  %1734 = vmatprep.mubr.f32.mxu0 %v1642_v59  ;;  %v1649_v54 = vmul.f32 %v1355_v29, %v334_v37  ;;  %v486_v47 = vld [vmem:[%s3676_s6 + $0x3c8] sm:$0xff]  ;;  %v485_v37 = vld [vmem:[%s3676_s6 + $0x3c0] sm:$0xff] }
 0x1d4   : > { %2410 = vmatprep.subr.mxu0 %v458_v44  ;;  %v1357_v9 = vpop.f32.mrf.mxu0  ;;  %1735 = vmatmul.mubr.f32.gmra.mxu0 %v1641_v23  ;;  %v470_v59 = vld [vmem:[%s3676_s6 + $0x348] sm:$0xff] }
 0x1d5   : > { %2411 = vmatpush3.msra.mxu0 %v442_v14  ;;  %v1650_v61 = vmul.f32 %v1357_v9, %v335_v18  ;;  %v448_v14 = vld [vmem:[%s3676_s6 + $0x298] sm:$0xff] }
 0x1d6   : > { %2412 = vmatprep.subr.mxu0 %v457_v55  ;;  %v3375_v62 = vpop.f32.mrf.mxu0  ;;  %v432_v9 = vld [vmem:[%s3676_s6 + $0x218] sm:$0xff] }
 0x1d7   : > { %2413 = vmatpush3.msra.mxu0 %v441_v56  ;;  %1739 = vmatprep.mubr.f32.mxu0 %v1650_v61  ;;  %v342_v56 = vld [vmem:[%s3340_s9 + $0xc0] sm:$0xff]  ;;  %v345_v61 = vld [vmem:[%s3340_s9 + $0xd8] sm:$0xff] }
 0x1d8   : > { %v1432_v6 = vpop.f32.mrf.mxu1  ;;  %2414 = vmatprep.subr.mxu0 %v456_v1  ;;  %v1363_v50 = vpop.f32.mrf.mxu0  ;;  %1740 = vmatmul.mubr.f32.gmra.mxu0 %v1649_v54  ;;  %v469_v54 = vld [vmem:[%s3676_s6 + $0x340] sm:$0xff]  ;;  %v484_v1 = vld [vmem:[%s3676_s6 + $0x3b8] sm:$0xff] }
 0x1d9   : > { %2415 = vmatpush3.msra.mxu0 %v440_v0  ;;  %v1658_v13 = vmul.f32 %v1363_v50, %v343_v2  ;;  %v1635_v20 = vmul.f32 %v1432_v6, %v320_v63  ;;  %v344_v2 = vld [vmem:[%s3340_s9 + $0xd0] sm:$0xff]  ;;  %v468_v6 = vld [vmem:[%s3676_s6 + $0x338] sm:$0xff] }
 0x1da   : > { %v1434_v10 = vpop.f32.mrf.mxu1  ;;  %2416 = vmatprep.subr.mxu0 %v455_v27  ;;  %v1657_v27 = vmul.f32 %v3375_v62, %v342_v56  ;;  %v483_v63 = vld [vmem:[%s3676_s6 + $0x3b0] sm:$0xff] }
 0x1db   : > { %v1636_v16 = vmul.f32 %v1434_v10, %v321_v42  ;;  %2417 = vmatpush3.msra.mxu0 %v439_v7  ;;  %1744 = vmatprep.mubr.f32.mxu0 %v1658_v13  ;;  %v447_v42 = vld [vmem:[%s3676_s6 + $0x290] sm:$0xff] }
 0x1dc   : > { %v1438_v45 = vpop.f32.mrf.mxu1  ;;  %2418 = vmatprep.subr.mxu0 %v454_v11  ;;  %v431_v7 = vld [vmem:[%s3676_s6 + $0x210] sm:$0xff]  ;;  %1745 = vmatmul.mubr.f32.gmra.mxu0 %v1657_v27  ;;  %v357_v27 = vld [vmem:[%s3675_s5] sm:$0xff] }
 0x1dd   : > { %1814 = vmatprep.mubr.f32.mxu1 %v1636_v16  ;;  %v3404_v21 = vpop.f32.mrf.mxu0  ;;  %2419 = vmatpush3.msra.mxu0 %v438_v17  ;;  %v1643_v15 = vmul.f32 %v1438_v45, %v328_v19  ;;  %v467_v62 = vld [vmem:[%s3676_s6 + $0x330] sm:$0xff]  ;;  %v323_v16 = vld [vmem:[%s3340_s9 + $0x28] sm:$0xff] }
 0x1de   : > { %1815 = vmatmul.mubr.f32.vlgmr.msra.gmra.mxu1 %v1635_v20  ;;  %v1440_v12 = vpop.f32.mrf.mxu1  ;;  %2420 = vmatprep.subr.mxu0 %v453_v49  ;;  %v446_v17 = vld [vmem:[%s3676_s6 + $0x288] sm:$0xff]  ;;  %v322_v20 = vld [vmem:[%s3340_s9 + $0x20] sm:$0xff] }
 0x1df   : > { %2451 = vmatpush3.msra.mxu1 %v476_v8  ;;  %2421 = vmatpush3.msra.mxu0 %v437_v57  ;;  %v1644_v26 = vmul.f32 %v1440_v12, %v329_v46  ;;  %v3432_v58 = vpop.f32.mrf.mxu0  ;;  %v482_v8 = vld [vmem:[%s3676_s6 + $0x3a8] sm:$0xff]  ;;  %v481_v46 = vld [vmem:[%s3676_s6 + $0x3a0] sm:$0xff]  ;;  %v325_v12 = vld [vmem:[%s3340_s9 + $0x38] sm:$0xff] }
 0x1e0   : > { %2452 = vmatprep.subr.mxu1 %v491_v36  ;;  %v1444_v28 = vpop.f32.mrf.mxu1  ;;  %2422 = vmatprep.subr.mxu0 %v452_v3  ;;  %v430_v49 = vld [vmem:[%s3676_s6 + $0x208] sm:$0xff]  ;;  %v445_v3 = vld [vmem:[%s3676_s6 + $0x280] sm:$0xff] }
 0x1e1   : > { %2453 = vmatpush3.msra.mxu1 %v475_v38  ;;  %2423 = vmatpush3.msra.mxu0 %v436_v22  ;;  %v3453_v41 = vpop.f32.mrf.mxu0  ;;  %v1651_v55 = vmul.f32 %v1444_v28, %v336_v5  ;;  %v466_v45 = vld [vmem:[%s3676_s6 + $0x328] sm:$0xff]  ;;  %v1638_v38 = vmul.f32 %v3432_v58, %v323_v16  ;;  %v1637_v22 = vmul.f32 %v3404_v21, %v322_v20  ;;  %v465_v28 = vld [vmem:[%s3676_s6 + $0x320] sm:$0xff]  ;;  %v480_v21 = vld [vmem:[%s3676_s6 + $0x398] sm:$0xff] }
 0x1e2   : > { %2454 = vmatprep.subr.mxu1 %v490_v34  ;;  %v1446_v31 = vpop.f32.mrf.mxu1  ;;  %2424 = vmatprep.subr.mxu0 %v451_v25  ;;  %v331_v36 = vld [vmem:[%s3340_s9 + $0x68] sm:$0xff]  ;;  %v330_v25 = vld [vmem:[%s3340_s9 + $0x60] sm:$0xff]  ;;  %v464_v58 = vld [vmem:[%s3676_s6 + $0x318] sm:$0xff] }
 0x1e3   : > { %2455 = vmatpush3.msra.mxu1 %v474_v60  ;;  %2425 = vmatpush3.msra.mxu0 %v435_v24  ;;  %v1652_v23 = vmul.f32 %v1446_v31, %v337_v39  ;;  %v1529_v29 = vpop.f32.mrf.mxu0  ;;  %v429_v60 = vld [vmem:[%s3676_s6 + $0x200] sm:$0xff]  ;;  %v1645_v31 = vmul.f32 %v3453_v41, %v330_v25  ;;  %v478_v39 = vld [vmem:[%s3676_s6 + $0x388] sm:$0xff]  ;;  %v333_v41 = vld [vmem:[%s3340_s9 + $0x78] sm:$0xff] }
 0x1e4   : > { %2456 = vmatprep.subr.mxu1 %v489_v30  ;;  %1819 = vmatprep.mubr.f32.mxu1 %v1644_v26  ;;  %v1646_v30 = vmul.f32 %v1529_v29, %v331_v36  ;;  %v339_v26 = vld [vmem:[%s3340_s9 + $0xa8] sm:$0xff] }
 0x1e5   : > { %2457 = vmatpush3.msra.mxu1 %v473_v32  ;;  %v1450_v40 = vpop.f32.mrf.mxu1  ;;  %2426 = vmatprep.subr.mxu0 %v450_v51  ;;  %v3504_v50 = vpop.f32.mrf.mxu0  ;;  %v338_v51 = vld [vmem:[%s3340_s9 + $0xa0] sm:$0xff] }
 0x1e6   : > { %2458 = vmatprep.subr.mxu1 %v488_v48  ;;  %2427 = vmatpush3.msra.mxu0 %v434_v53  ;;  %v1659_v13 = vmul.f32 %v1450_v40, %v344_v2  ;;  %v479_v48 = vld [vmem:[%s3676_s6 + $0x390] sm:$0xff]  ;;  %v347_v53 = vld [vmem:[%s3340_s9 + $0xe8] sm:$0xff]  ;;  %v1653_v5 = vmul.f32 %v3504_v50, %v338_v51 }
 0x1e7   : > { %2459 = vmatpush3.msra.mxu1 %v472_v33  ;;  %v1452_v44 = vpop.f32.mrf.mxu1  ;;  %2428 = vmatprep.subr.mxu0 %v449_v43  ;;  %v1535_v57 = vpop.f32.mrf.mxu0  ;;  %v462_v40 = vld [vmem:[%s3676_s6 + $0x308] sm:$0xff]  ;;  %v324_v43 = vld [vmem:[%s3340_s9 + $0x30] sm:$0xff] }
 0x1e8   : > { %2460 = vmatprep.subr.mxu1 %v487_v4  ;;  %1820 = vmatmul.mubr.f32.gmra.mxu1 %v1643_v15  ;;  %v1660_v10 = vmul.f32 %v1452_v44, %v345_v61  ;;  %v463_v15 = vld [vmem:[%s3676_s6 + $0x310] sm:$0xff]  ;;  %v1654_v33 = vmul.f32 %v1535_v57, %v339_v26 }
 0x1e9   : > { %2461 = vmatpush3.msra.mxu1 %v471_v35  ;;  %v3477_v18 = vpop.f32.mrf.mxu1  ;;  %2429 = vmatpush3.msra.mxu0 %v433_v52  ;;  %v1539_v24 = vpop.f32.mrf.mxu0  ;;  %v461_v52 = vld [vmem:[%s3676_s6 + $0x300] sm:$0xff] }
 0x1ea   : > { %2462 = vmatprep.subr.mxu1 %v486_v47  ;;  %1824 = vmatprep.mubr.f32.mxu1 %v1652_v23  ;;  %v477_v47 = vld [vmem:[%s3676_s6 + $0x380] sm:$0xff] }
 0x1eb   : > { %2463 = vmatpush3.msra.mxu1 %v470_v59  ;;  %v1612_v0 = vpop.f32.mrf.mxu1  ;;  %2430 = vmatprep.subr.mxu0 %v448_v14  ;;  %v1541_v4 = vpop.f32.mrf.mxu0  ;;  %v346_v23 = vld [vmem:[%s3340_s9 + $0xe0] sm:$0xff]  ;;  %v341_v14 = vld [vmem:[%s3340_s9 + $0xb8] sm:$0xff] }
 0x1ec   : > { %2464 = vmatprep.subr.mxu1 %v485_v37  ;;  %2431 = vmatpush3.msra.mxu0 %v432_v9  ;;  %v1640_v19 = vmul.f32 %v1612_v0, %v325_v12  ;;  %v1662_v44 = vmul.f32 %v1541_v4, %v347_v53  ;;  %v1639_v37 = vmul.f32 %v3477_v18, %v324_v43  ;;  %v340_v0 = vld [vmem:[%s3340_s9 + $0xb0] sm:$0xff] }
 0x1ed   : > { %2465 = vmatpush3.msra.mxu1 %v469_v54  ;;  %v3509_v11 = vpop.f32.mrf.mxu1  ;;  %2432 = vmatprep.subr.mxu0 %v447_v42  ;;  %v1661_v56 = vmul.f32 %v1539_v24, %v346_v23 }
 0x1ee   : > { %2466 = vmatprep.subr.mxu1 %v484_v1  ;;  %1825 = vmatmul.mubr.f32.gmra.mxu1 %v1651_v55  ;;  %v332_v55 = vld [vmem:[%s3340_s9 + $0x70] sm:$0xff]  ;;  %v349_v1 = vld [vmem:[%s3340_s9 + $0xf8] sm:$0xff] }
 0x1ef   : > { %2467 = vmatpush3.msra.mxu1 %v468_v6  ;;  %2433 = vmatpush3.msra.mxu0 %v431_v7  ;;  %v1618_v34 = vpop.f32.mrf.mxu1  ;;  %v1647_v9 = vmul.f32 %v3509_v11, %v332_v55  ;;  %v348_v6 = vld [vmem:[%s3340_s9 + $0xf0] sm:$0xff]  ;;  %s297_s9 = sand.u32 1, %s2656_s25  }
 0x1f0   : > { %2468 = vmatprep.subr.mxu1 %v483_v63  ;;  %1829 = vmatprep.mubr.f32.mxu1 %v1660_v10  ;;  %v1648_v59 = vmul.f32 %v1618_v34, %v333_v41  ;;  %s2248_s22 = sshll.u32 %s297_s9, 6  ;;  %s3630_s28 = scalar_lea.sflag [#allocation3], %s297_s9 }
 0x1f1   : > { %2469 = vmatpush3.msra.mxu1 %v467_v62  ;;  %2434 = vmatprep.subr.mxu0 %v446_v17  ;;  %v1622_v32 = vpop.f32.mrf.mxu1  ;;  %s299_s23 = scalar_lea.vmem [#allocation2], %s2248_s22 }
 0x1f2   : > { %2470 = vmatprep.subr.mxu1 %v482_v8  ;;  %1830 = vmatmul.mubr.f32.gmra.mxu1 %v1659_v13  ;;  %v1655_v2 = vmul.f32 %v1622_v32, %v340_v0  ;;  %s2158_s8 = sshll.u32 %s299_s23, 4  ;;  %s3626_s8 = int_to_ptr.vmem [resolvable:$true] %s2158_s8 }
 0x1f3   : > { %2435 = vmatpush3.msra.mxu0 %v430_v49  ;;  %2471 = vmatpush3.msra.mxu1 %v466_v45  ;;  %v1624_v35 = vpop.f32.mrf.mxu1  ;;  %s2604_s16 = scalar_lea.vmem %s3626_s8, 1024  ;;  %p2611_p0 = scmp.lt.s32.totalorder %s3626_s8, %s2609_s18 }
 0x1f4   : > { %2436 = vmatprep.subr.mxu0 %v445_v3  ;;  %2472 = vmatprep.subr.mxu1 %v481_v46  ;;  %v1656_v54 = vmul.f32 %v1624_v35, %v341_v14  ;;  %p2605_p11 = scmp.ne.s32.totalorder %s3626_s8, %s2604_s16  ;;  %p2612_p1 = scmp.lt.s32.totalorder %s2610_s19, %s2604_s16 }
 0x1f5   : > { %2437 = vmatpush3.msra.mxu0 %v429_v60  ;;  %1899 = vmatprep.mubr.f32.mxu0 %v1638_v38  ;;  %v1628_v29 = vpop.f32.mrf.mxu1 }
 0x1f6   : > { %2473 = vmatpush3.msra.mxu1 %v465_v28  ;;  %1900 = vmatmul.mubr.f32.vlgmr.msra.gmra.mxu0 %v1637_v22  ;;  %v1663_v42 = vmul.f32 %v1628_v29, %v348_v6  ;;  %v359_v6 = vld [vmem:[%s3675_s5 + $0x10] sm:$0xff]  ;;  %p2606_p12 = pnand %p2605_p11, %p2748_p5  ;;  %p2613_p2 = por %p2612_p1, %p2611_p0 }
 0x1f7   : > { %2474 = vmatprep.subr.mxu1 %v480_v21  ;;  %1904 = vmatprep.mubr.f32.mxu0 %v1646_v30  ;;  %v1630_v61 = vpop.f32.mrf.mxu1 }
 0x1f8   : > { %2475 = vmatpush3.msra.mxu1 %v464_v58  ;;  %1984 = vmatprep.mubr.f32.mxu1 %v1640_v19  ;;  %v1664_v18 = vmul.f32 %v1630_v61, %v349_v1  ;;  %p2607_p13 = pneg %p2606_p12 }
 0x1f9   : > { %2476 = vmatprep.subr.mxu1 %v479_v48 }
 0x1fa   : > { %2477 = vmatpush3.msra.mxu1 %v463_v15  ;;  %1905 = vmatmul.mubr.f32.gmra.mxu0 %v1645_v31  ;;  %p2614_p3 = pnand %p2613_p2, %p2607_p13 }
 0x1fb   : > { %2478 = vmatprep.subr.mxu1 %v478_v39  ;;  %1909 = vmatprep.mubr.f32.mxu0 %v1654_v33 }
 0x1fc   : > { %2479 = vmatpush3.msra.mxu1 %v462_v40 }
 0x1fd   : > { %2480 = vmatprep.subr.mxu1 %v477_v47 }
 0x1fe   : > { %2481 = vmatpush3.msra.mxu1 %v461_v52  ;;  %1910 = vmatmul.mubr.f32.gmra.mxu0 %v1653_v5 }
 0x1ff   : > { %1985 = vmatmul.mubr.f32.vlgmr.msra.gmra.mxu1 %v1639_v37  ;;  %1914 = vmatprep.mubr.f32.mxu0 %v1662_v44 }
 0x200   : > { %1989 = vmatprep.mubr.f32.mxu1 %v1648_v59 }
 0x202   : > { %1915 = vmatmul.mubr.f32.gmra.mxu0 %v1661_v56 }
 0x203   : > { %1990 = vmatmul.mubr.f32.gmra.mxu1 %v1647_v9  ;;  %2514 = vmatprep.mubr.msk.f32.mxu0 %vm2005_vm15, %v357_v27  ;;  %v361_v27 = vld [vmem:[%s3675_s5 + $0x20] sm:$0xff] }
 0x204   : > { %1994 = vmatprep.mubr.f32.mxu1 %v1656_v54 }
 0x207   : > { %1995 = vmatmul.mubr.f32.gmra.mxu1 %v1655_v2  ;;  %v358_v2 = vld [vmem:[%s3675_s5 + $0x8] sm:$0xff] }
 0x208   : > { %1999 = vmatprep.mubr.f32.mxu1 %v1664_v18 }
 0x20b   : > { %2000 = vmatmul.mubr.f32.gmra.mxu1 %v1663_v42  ;;  %v360_v42 = vld [vmem:[%s3675_s5 + $0x18] sm:$0xff] }
 0x290   : > { %v2350_v63 = vpop.f32.mrf.mxu0 }
 0x292   : > { %v2351_v7 = vpop.f32.mrf.mxu0 }
 0x293   : > { %v2352_v44 = vadd.f32 %v2351_v7, %v2350_v63  ;;  %v362_v63 = vld [vmem:[%s3675_s5 + $0x28] sm:$0xff]  ;;  %v363_v7 = vld [vmem:[%s3675_s5 + $0x30] sm:$0xff] }
 0x294   : > { %v2353_v50 = vpop.f32.mrf.mxu0 }
 0x296   : > { %v2354_v62 = vpop.f32.mrf.mxu0 }
 0x297   : > { %v2355_v33 = vadd.f32 %v2354_v62, %v2353_v50  ;;  %v364_v50 = vld [vmem:[%s3675_s5 + $0x38] sm:$0xff] }
 0x298   : > { %v2356_v13 = vpop.f32.mrf.mxu0 }
 0x29a   : > { %v2357_v17 = vpop.f32.mrf.mxu0 }
 0x29b   : > { %v2358_v31 = vadd.f32 %v2357_v17, %v2356_v13 }
 0x29c   : > { %v2359_v8 = vpop.f32.mrf.mxu0 }
 0x29e   : > { %v2394_v10 = vpop.f32.mrf.mxu1  ;;  %v2360_v45 = vpop.f32.mrf.mxu0 }
 0x29f   : > { %v2361_v58 = vadd.f32 %v2360_v45, %v2359_v8 }
 0x2a0   : > { %v2395_v11 = vpop.f32.mrf.mxu1 }
 0x2a1   : > { %v2396_v41 = vadd.f32 %v2395_v11, %v2394_v10 }
 0x2a3   : > { %v1817_v56 = vadd.f32 %v2396_v41, %v2352_v44 }
 0x2a8   : > { %v2397_v16 = vpop.f32.mrf.mxu1 }
 0x2aa   : > { %v2398_v20 = vpop.f32.mrf.mxu1 }
 0x2ab   : > { %v2399_v39 = vadd.f32 %v2398_v20, %v2397_v16 }
 0x2ad   : > { %v1822_v59 = vadd.f32 %v2399_v39, %v2355_v33 }
 0x2ae   : > { %v2400_v49 = vpop.f32.mrf.mxu1 }
 0x2b0   : > { %v2401_v36 = vpop.f32.mrf.mxu1 }
 0x2b1   : > { %v2402_v48 = vadd.f32 %v2401_v36, %v2400_v49 }
 0x2b2   : > { %v2403_v3 = vpop.f32.mrf.mxu1 }
 0x2b3   : > { %v1827_v35 = vadd.f32 %v2402_v48, %v2358_v31 }
 0x2b4   : > { %v2404_v34 = vpop.f32.mrf.mxu1 }
 0x2b5   : > { %v2405_v32 = vadd.f32 %v2404_v34, %v2403_v3 }
 0x2b6   : > { %v2438_v57 = vpop.f32.mrf.mxu0 }
 0x2b7   : > { %v1832_v4 = vadd.f32 %v2405_v32, %v2361_v58 }
 0x2b8   : > { %v2439_v38 = vpop.f32.mrf.mxu0 }
 0x2b9   : > { %v2440_v37 = vadd.f32 %v2439_v38, %v2438_v57 }
 0x2ba   : > { %v2441_v46 = vpop.f32.mrf.mxu0 }
 0x2bb   : > { %v1902_v61 = vadd.f32 %v2440_v37, %v1817_v56 }
 0x2bc   : > { %v2442_v12 = vpop.f32.mrf.mxu0 }
 0x2bd   : > { %v2443_v5 = vadd.f32 %v2442_v12, %v2441_v46 }
 0x2be   : > { %v2444_v22 = vpop.f32.mrf.mxu0 }
 0x2bf   : > { %v2482_v60 = vpop.f32.mrf.mxu1  ;;  %v1907_v54 = vadd.f32 %v2443_v5, %v1822_v59 }
 0x2c0   : > { %v2445_v25 = vpop.f32.mrf.mxu0 }
 0x2c1   : > { %v2483_v28 = vpop.f32.mrf.mxu1  ;;  %v2446_v40 = vadd.f32 %v2445_v25, %v2444_v22 }
 0x2c2   : > { %v2447_v30 = vpop.f32.mrf.mxu0  ;;  %v2484_v9 = vadd.f32 %v2483_v28, %v2482_v60 }
 0x2c3   : > { %v2485_v21 = vpop.f32.mrf.mxu1  ;;  %v1912_v14 = vadd.f32 %v2446_v40, %v1827_v35 }
 0x2c4   : > { %v2448_v26 = vpop.f32.mrf.mxu0  ;;  %v1987_v18 = vadd.f32 %v2484_v9, %v1902_v61 }
 0x2c5   : > { %v2486_v19 = vpop.f32.mrf.mxu1  ;;  %v2449_v15 = vadd.f32 %v2448_v26, %v2447_v30 }
 0x2c6   : > { %v2487_v29 = vadd.f32 %v2486_v19, %v2485_v21 }
 0x2c7   : > { %v2488_v24 = vpop.f32.mrf.mxu1  ;;  %v1917_v47 = vadd.f32 %v2449_v15, %v1832_v4 }
 0x2c8   : > { %v1992_v0 = vadd.f32 %v2487_v29, %v1907_v54 }
 0x2c9   : > { %v2489_v51 = vpop.f32.mrf.mxu1 }
 0x2ca   : > { %v2490_v23 = vadd.f32 %v2489_v51, %v2488_v24 }
 0x2cb   : > { %v2491_v53 = vpop.f32.mrf.mxu1 }
 0x2cc   : > { %v1997_v1 = vadd.f32 %v2490_v23, %v1912_v14 }
 0x2cd   : > { %v2492_v43 = vpop.f32.mrf.mxu1 }
 0x2ce   : > { %v2493_v52 = vadd.f32 %v2492_v43, %v2491_v53 }
 0x2d0   : > { %v2002_v55 = vadd.f32 %v2493_v52, %v1917_v47 }
 0x2d2   : > { %2506 = vmatprep.subr.mxu0 %v2002_v55 }
 0x2d3   : > { %2507 = vmatpush3.msra.mxu0 %v2002_v55 }
 0x2d4   : > { %2508 = vmatprep.subr.mxu0 %v1997_v1 }
 0x2d5   : > { %2509 = vmatpush3.msra.mxu0 %v1997_v1 }
 0x2d6   : > { %2510 = vmatprep.subr.mxu0 %v1992_v0 }
 0x2d7   : > { %2511 = vmatpush3.msra.mxu0 %v1992_v0 }
 0x2d8   : > { %2512 = vmatprep.subr.mxu0 %v1987_v18 }
 0x2d9   : > { %2513 = vmatpush3.msra.mxu0 %v1987_v18 }
 0x2da   : > { %2515 = vmatmul.mubr.msk.f32.vlgmr.msra.gmra.mxu0 %vm2005_vm15, %v358_v2 }
 0x2db   : > { %2517 = vmatprep.mubr.msk.f32.mxu0 %vm2005_vm15, %v359_v6 }
 0x2de   : > { %2518 = vmatmul.mubr.msk.f32.gmra.mxu0 %vm2005_vm15, %v360_v42 }
 0x2df   : > { %2520 = vmatprep.mubr.msk.f32.mxu0 %vm2005_vm15, %v361_v27 }
 0x2e2   : > { %2521 = vmatmul.mubr.msk.f32.gmra.mxu0 %vm2005_vm15, %v362_v63 }
 0x2e3   : > { %2523 = vmatprep.mubr.msk.f32.mxu0 %vm2005_vm15, %v363_v7 }
 0x2e6   : > { %2524 = vmatmul.mubr.msk.f32.gmra.mxu0 %vm2005_vm15, %v364_v50 }
 0x39a   : > { %v2516_v10 = vpop.f32.mrf.mxu0 }
 0x39b   : > { %2137 = vst.msk [vmem:[%s299_s23 + $0x8] sm:$0xff] %vm2135_vm0, %v2516_v10 }
 0x39c   : > { %v2096_v62 = vpop.f32.mrf.mxu0 }
 0x39d   : > { %2136 = vst.msk [vmem:[%s299_s23] sm:$0xff] %vm2135_vm0, %v2096_v62 }
 0x39e   : > { %v2519_v11 = vpop.f32.mrf.mxu0 }
 0x39f   : > { %2139 = vst.msk [vmem:[%s299_s23 + $0x18] sm:$0xff] %vm2135_vm0, %v2519_v11 }
 0x3a0   : > { %v2106_v13 = vpop.f32.mrf.mxu0 }
 0x3a1   : > { %2138 = vst.msk [vmem:[%s299_s23 + $0x10] sm:$0xff] %vm2135_vm0, %v2106_v13 }
 0x3a2   : > { %v2522_v16 = vpop.f32.mrf.mxu0 }
 0x3a3   : > { %2141 = vst.msk [vmem:[%s299_s23 + $0x28] sm:$0xff] %vm2135_vm0, %v2522_v16 }
 0x3a4   : > { %v2116_v17 = vpop.f32.mrf.mxu0 }
 0x3a5   : > { %2140 = vst.msk [vmem:[%s299_s23 + $0x20] sm:$0xff] %vm2135_vm0, %v2116_v17 }
 0x3a6   : > { %v2525_v20 = vpop.f32.mrf.mxu0 }
 0x3a7   : > { %2143 = vst.msk [vmem:[%s299_s23 + $0x38] sm:$0xff] %vm2135_vm0, %v2525_v20 }
 0x3a8   : > { %v2126_v8 = vpop.f32.mrf.mxu0 }
 0x3a9   : > { %2142 = vst.msk [vmem:[%s299_s23 + $0x30] sm:$0xff] %vm2135_vm0, %v2126_v8 }
 0x3aa   : > { %2617 = shalt.err (!%p2614_p3)
}
 0x3ab   : > { %s2618_s20 = scalar_lea.hbm %s3624_s15, 1024  ;;  %s2622_s22 = scalar_lea.hbm %s3677_s7, 2048 }
 0x3ac   : > { %p2619_p4 = scmp.ne.s32.totalorder %s3624_s15, %s2618_s20  ;;  %p2623_p9 = scmp.lt.s32.totalorder %s3624_s15, %s3677_s7 }
 0x3ad   : > { %p2624_p10 = scmp.lt.s32.totalorder %s2622_s22, %s2618_s20 }
 0x3ae   : > { %p2620_p7 = pnand %p2619_p4, %p2748_p5 }
 0x3af   : > { %p2625_p11 = por %p2624_p10, %p2623_p9 }
 0x3b0   : > { %p2621_p8 = pneg %p2620_p7 }
 0x3b2   : > { %p2626_p12 = pnand %p2625_p11, %p2621_p8 }
 0x3b4   : > { %2629 = shalt.err (!%p2626_p12)
}
 0x3b5   : > { %s2668_s13 = smov 128   ;;  %s2669_s14 = smov 8  }
 0x3b6   : > { %2526 = dma.vmem_to_hbm [thread:$0]  (%p2748_p5), %s3626_s8, 1024, %s3624_s15, %s3630_s28, %s2668_s13, %s2668_s13, %s2669_s14  }
 0x3b7 PF: > { %p2532_p13 = scmp.ge.s32.totalorder %s2664_s27, 2  ;;  %s2173_s16 = sand.u32 1, %s2652_s24  }
 0x3b8   : > { %s2174_s17 = scalar_lea.sflag [#allocation3], %s2173_s16 }
 0x3b9   : > { %p2529_p0 = pnand %p2532_p13, %p2752_p6 }
 0x3bb   : > { %p2530_p1 = pneg %p2529_p0 }
 0x3bd   : > { %2647 = dma.done.wait (%p2530_p1), %s2174_s17, 1024  }
 0x3be   : > { %2649 = vsyncadd (%p2530_p1), %s2174_s17, 4294966272  ;;  %p17_p2 = scmp.ge.s32.totalorder %s2735_s30, 4   ;;  %s3680_s24 = smov %s2656_s25 }
 0x3bf   : > { %s3681_s25 = smov %s2660_s26  ;;  %s3682_s26 = smov %s2746_s10 }
 0x3c0   : > { %s3683_s27 = smov %s2735_s30  ;;  %19 = sbr.rel (!%p17_p2) target bundleno = 3 (0x3), region = 89 }
 0x3c5   :  { %2179 = vsyncpa [#allocation3], 1 }
 0x3c6   :  { %2181 = vsyncpa [#allocation3 + $0x1], 1 }

</bundles_post_ra>
